<compile_context>
chip_gen: v7x
topology: tpu7x:2x2x1
jax: 0.10.0
libtpu: 0.0.40
codegen_flags: <defaults>
</compile_context>

<pallas_src>
import jax
import jax.numpy as jnp
from jax.experimental import pallas as pl
from jax.experimental.pallas import tpu as pltpu


# (in_features, out_features) per layer, encoder -> z -> decoder
_LAYER_SIZES = [(128, 90), (90, 64), (64, 32),   # encoder
                (32, 16),                        # z_layer
                (16, 32), (32, 64), (64, 128)]   # decoder


def _encoder_kernel(x_ref,
                    w1_ref, b1_ref, w2_ref, b2_ref, w3_ref, b3_ref,
                    wz_ref, bz_ref,
                    wd1_ref, bd1_ref, wd2_ref, bd2_ref, wd3_ref, bd3_ref,
                    z_ref, psum_ref):
    # ---- input: [128, TB] uint8 pixels, batch on lanes ----------------------
    # Feed the matmul chain from a bf16 normalize (0..255 is exact in bf16, so
    # u8->f32->bf16 loses nothing); the f32 x is recomputed only for the loss
    # so no [128, TB] f32 slab stays live across all 7 matmuls.
    x_bf = (x_ref[...].astype(jnp.float32).astype(jnp.bfloat16)
            * jnp.bfloat16(1.0 / 255.0))                       # [128, TB] bf16

    def linear(w_ref, b_ref, h_bf):
        # W [out, in] (bf16, VMEM-resident) @ h [in, TB] (bf16)
        # -> f32 MXU accumulation, f32 bias add ([out, 1] broadcast over lanes)
        return jnp.dot(w_ref[...], h_bf,
                       preferred_element_type=jnp.float32) + b_ref[...]

    def relu_bf(a_f32):
        return jnp.maximum(a_f32, 0.0).astype(jnp.bfloat16)

    # ---- encoder: 128 -> 90 -> 64 -> 32, ReLU after each --------------------
    h = relu_bf(linear(w1_ref, b1_ref, x_bf))                  # [90, TB]
    h = relu_bf(linear(w2_ref, b2_ref, h))                     # [64, TB]
    h = relu_bf(linear(w3_ref, b3_ref, h))                     # [32, TB]

    # ---- z layer: 32 -> 16, no activation -----------------------------------
    z = linear(wz_ref, bz_ref, h)                              # [16, TB] f32
    z_ref[...] = z.astype(z_ref.dtype)                         # lane-dense store

    # ---- decoder: 16 -> 32 -> 64 -> 128, ReLU after each --------------------
    d = relu_bf(linear(wd1_ref, bd1_ref, z.astype(jnp.bfloat16)))   # [32, TB]
    d = relu_bf(linear(wd2_ref, bd2_ref, d))                        # [64, TB]
    x_hat = jnp.maximum(linear(wd3_ref, bd3_ref, d), 0.0)           # [128, TB] f32

    # ---- per-tile sum of squared reconstruction error -> SMEM scalar slot ---
    # Recompute the f32 normalized x from the resident u8 tile (one
    # load+convert+mul per vreg; keeps register pressure bounded above).
    x_f32 = x_ref[...].astype(jnp.float32) * jnp.float32(1.0 / 255.0)
    diff = x_hat - x_f32
    psum_ref[0, 0] = jnp.sum(diff * diff)


def _batch_tile(batch):
    # Pick the largest tile that divides the batch; big tiles amortize the
    # fixed per-grid-step cost and keep DMAs large.  2048 is capped here to
    # stay comfortably under the v5e 16 MiB scoped-VMEM default; pass
    # batch_tile=4096+ explicitly on v6e/v7x if B allows and you want to sweep.
    for tb in (2048, 1024, 512, 256, 128):
        if batch % tb == 0:
            return tb
    return batch   # full-extent block is always a legal block shape


def encoder_forward(state, params, *, batch_tile=None):
    """state: [B, 128] uint8 raw pixels (matches `state.astype(np.float32)/255`
    in the torch module).
    params: 7 (w [out,in] f32, b [out,1] f32) pairs (native PyTorch layout).
    Returns (z [B,16] f32, r_loss scalar f32)."""
    B, F = state.shape
    assert F == 128, "ENCODER expects 128 input features"
    tb = batch_tile or _batch_tile(B)
    assert B % tb == 0, "batch must be divisible by the batch tile"
    grid = B // tb

    # feature-major: batch on lanes (one-line wrapper transpose of the u8 input)
    x_t = state.T                                              # [128, B] uint8

    flat_args = [x_t]
    # Streamed input: the only per-step DMA.  (If xprof ever shows exposed
    # input DMA at tile boundaries, add pipeline_mode=pl.Buffered(3) here.)
    in_specs = [pl.BlockSpec((128, tb), lambda i: (0, i))]
    for (w, b) in params:
        fout, fin = w.shape
        # bf16 weights halve weight DMA bytes and hit the bf16 MXU path;
        # biases stay f32 (negligible bytes, better numerics).  Constant
        # index_map => resident in VMEM across all grid steps (~60 KiB total).
        flat_args += [w.astype(jnp.bfloat16), b.astype(jnp.float32)]
        in_specs += [pl.BlockSpec((fout, fin), lambda i: (0, 0)),
                     pl.BlockSpec((fout, 1), lambda i: (0, 0))]

    z_t, psums = pl.pallas_call(
        _encoder_kernel,
        grid=(grid,),
        in_specs=in_specs,
        out_specs=(
            # z as a lane-dense (16, TB) slab (last dim >= 128 for TB >= 128)
            pl.BlockSpec((16, tb), lambda i: (0, i)),
            # per-tile loss partials: one SMEM scalar slot per grid step, so
            # the "parallel" batch axis stays iteration-order independent
            pl.BlockSpec((1, 1), lambda i: (i, 0),
                         memory_space=pltpu.MemorySpace.SMEM),
        ),
        out_shape=(jax.ShapeDtypeStruct((16, B), jnp.float32),
                   jax.ShapeDtypeStruct((grid, 1), jnp.float32)),
        compiler_params=pltpu.CompilerParams(
            dimension_semantics=("parallel",)),   # v7x: shard batch over 2 TCs
    )(*flat_args)

    # tiny final reduction over `grid` partials; mean over B*128 elements
    r_loss = jnp.sum(psums) / jnp.float32(B * F)
    return z_t.T, r_loss


def init_params(key):
    """Deterministic parameter init in native PyTorch layout: weights [out,in],
    biases [out,1], nn.Linear-style uniform(-1/sqrt(in), 1/sqrt(in)) ranges.
    (The torch source applies an undefined `weights_init`; this stands in.)"""
    params = []
    for (fin, fout) in _LAYER_SIZES:
        key, kw, kb = jax.random.split(key, 3)
        scale = 1.0 / jnp.sqrt(jnp.float32(fin))
        w = jax.random.uniform(kw, (fout, fin), jnp.float32, -scale, scale)
        b = jax.random.uniform(kb, (fout, 1), jnp.float32, -scale, scale)
        params.append((w, b))
    return params


def reference_forward(state, params):
    """Pure-JAX reference with the identical dtype flow as the kernel
    (bf16 weights/activations into the matmuls, f32 accumulation, f32 loss).
    NOTE: a float32 PyTorch ENCODER will differ by roughly bf16 precision;
    keep the weights f32 in encoder_forward if exact f32 parity matters."""
    x_bf = state.T.astype(jnp.bfloat16) * jnp.bfloat16(1.0 / 255.0)  # [128, B]

    def linear(w, b, h_bf):
        return jnp.dot(w.astype(jnp.bfloat16), h_bf,
                       preferred_element_type=jnp.float32) + b

    h = x_bf
    for (w, b) in params[:3]:
        h = jnp.maximum(linear(w, b, h), 0.0).astype(jnp.bfloat16)
    wz, bz = params[3]
    z = linear(wz, bz, h)                                            # [16, B] f32
    d = z.astype(jnp.bfloat16)
    for (w, b) in params[4:6]:
        d = jnp.maximum(linear(w, b, d), 0.0).astype(jnp.bfloat16)
    wd3, bd3 = params[6]
    x_hat = jnp.maximum(linear(wd3, bd3, d), 0.0)                    # [128, B] f32

    x_f32 = state.T.astype(jnp.float32) / 255.0
    r_loss = jnp.mean((x_hat - x_f32) ** 2)
    return z.T, r_loss


if __name__ == "__main__":
    key = jax.random.PRNGKey(0)
    k_state, k_params = jax.random.split(key)

    B = 512
    # pixel-like raw uint8 input (matches `state.astype(np.float32) / 255.0`)
    state = jax.random.randint(k_state, (B, 128), 0, 256,
                               dtype=jnp.int32).astype(jnp.uint8)
    params = init_params(k_params)

    # default tiling: tb=512 -> single grid step
    z, r_loss = encoder_forward(state, params)
    # forced small tile: tb=128 -> 4 grid steps, exercises tiling + the
    # per-tile SMEM partial-sum loss reduction
    z2, r_loss2 = encoder_forward(state, params, batch_tile=128)
    jax.block_until_ready((z, r_loss, z2, r_loss2))

    # correctness check against a pure-JAX reference with identical dtype flow
    z_ref, loss_ref = reference_forward(state, params)
    assert z.shape == (B, 16) and z2.shape == (B, 16)
    assert jnp.allclose(z, z_ref, atol=1e-4, rtol=1e-4), "z mismatch (tb=512)"
    assert jnp.allclose(z2, z_ref, atol=1e-4, rtol=1e-4), "z mismatch (tb=128)"
    assert jnp.allclose(r_loss, loss_ref, atol=1e-4, rtol=1e-3), "loss mismatch (tb=512)"
    assert jnp.allclose(r_loss2, loss_ref, atol=1e-4, rtol=1e-3), "loss mismatch (tb=128)"

    print("KERNEL_OK")
</pallas_src>

<mosaic_0001>
module attributes {stable_mosaic.version = 11 : i64} {
  func.func @_encoder_kernel(%arg0: i32, %arg1: memref<128x512xi8, #tpu.memory_space<vmem>>, %arg2: memref<90x128xbf16, #tpu.memory_space<vmem>>, %arg3: memref<90x1xf32, #tpu.memory_space<vmem>>, %arg4: memref<64x90xbf16, #tpu.memory_space<vmem>>, %arg5: memref<64x1xf32, #tpu.memory_space<vmem>>, %arg6: memref<32x64xbf16, #tpu.memory_space<vmem>>, %arg7: memref<32x1xf32, #tpu.memory_space<vmem>>, %arg8: memref<16x32xbf16, #tpu.memory_space<vmem>>, %arg9: memref<16x1xf32, #tpu.memory_space<vmem>>, %arg10: memref<32x16xbf16, #tpu.memory_space<vmem>>, %arg11: memref<32x1xf32, #tpu.memory_space<vmem>>, %arg12: memref<64x32xbf16, #tpu.memory_space<vmem>>, %arg13: memref<64x1xf32, #tpu.memory_space<vmem>>, %arg14: memref<128x64xbf16, #tpu.memory_space<vmem>>, %arg15: memref<128x1xf32, #tpu.memory_space<vmem>>, %arg16: memref<16x512xf32, #tpu.memory_space<vmem>>, %arg17: memref<1x1xf32, #tpu.memory_space<smem>>) attributes {dimension_semantics = [#tpu.dimension_semantics<parallel>], iteration_bounds = array<i64: 1>, scalar_prefetch = 0 : i64, scratch_operands = 0 : i64, tpu.core_type = #tpu.core_type<tc>, window_params = [{transform_indices = @transform_0, window_bounds = array<i64: 128, 512>}, {pipeline_mode = #tpu.pipeline_mode<synchronous>, transform_indices = @transform_1, window_bounds = array<i64: 90, 128>}, {pipeline_mode = #tpu.pipeline_mode<synchronous>, transform_indices = @transform_2, window_bounds = array<i64: 90, 1>}, {pipeline_mode = #tpu.pipeline_mode<synchronous>, transform_indices = @transform_3, window_bounds = array<i64: 64, 90>}, {pipeline_mode = #tpu.pipeline_mode<synchronous>, transform_indices = @transform_4, window_bounds = array<i64: 64, 1>}, {pipeline_mode = #tpu.pipeline_mode<synchronous>, transform_indices = @transform_5, window_bounds = array<i64: 32, 64>}, {pipeline_mode = #tpu.pipeline_mode<synchronous>, transform_indices = @transform_6, window_bounds = array<i64: 32, 1>}, {pipeline_mode = #tpu.pipeline_mode<synchronous>, transform_indices = @transform_7, window_bounds = array<i64: 16, 32>}, {pipeline_mode = #tpu.pipeline_mode<synchronous>, transform_indices = @transform_8, window_bounds = array<i64: 16, 1>}, {pipeline_mode = #tpu.pipeline_mode<synchronous>, transform_indices = @transform_9, window_bounds = array<i64: 32, 16>}, {pipeline_mode = #tpu.pipeline_mode<synchronous>, transform_indices = @transform_10, window_bounds = array<i64: 32, 1>}, {pipeline_mode = #tpu.pipeline_mode<synchronous>, transform_indices = @transform_11, window_bounds = array<i64: 64, 32>}, {pipeline_mode = #tpu.pipeline_mode<synchronous>, transform_indices = @transform_12, window_bounds = array<i64: 64, 1>}, {pipeline_mode = #tpu.pipeline_mode<synchronous>, transform_indices = @transform_13, window_bounds = array<i64: 128, 64>}, {pipeline_mode = #tpu.pipeline_mode<synchronous>, transform_indices = @transform_14, window_bounds = array<i64: 128, 1>}, {transform_indices = @transform_15, window_bounds = array<i64: 16, 512>}, {transform_indices = @transform_16, window_bounds = array<i64: 1, 1>}]} {
    %c0 = arith.constant 0 : index
    %c0_0 = arith.constant 0 : index
    %0 = vector.load %arg1[%c0, %c0_0] : memref<128x512xi8, #tpu.memory_space<vmem>>, vector<128x512xi8>
    %1 = arith.uitofp %0 : vector<128x512xi8> to vector<128x512xf32>
    %2 = arith.truncf %1 : vector<128x512xf32> to vector<128x512xbf16>
    %cst = arith.constant 3.936770e-03 : bf16
    %3 = vector.broadcast %cst : bf16 to vector<128x512xbf16>
    %4 = arith.mulf %2, %3 : vector<128x512xbf16>
    %c0_1 = arith.constant 0 : index
    %c0_2 = arith.constant 0 : index
    %5 = vector.load %arg2[%c0_1, %c0_2] : memref<90x128xbf16, #tpu.memory_space<vmem>>, vector<90x128xbf16>
    %cst_3 = arith.constant dense<0.000000e+00> : vector<90x512xf32>
    %6 = tpu.matmul %5, %4, %cst_3 {dimension_numbers = #tpu.dot_dimension_numbers<[1], [0], [0], [1], [0, 0, 1, 1], [], []>} : vector<90x128xbf16>, vector<128x512xbf16>, vector<90x512xf32> -> vector<90x512xf32>
    %c0_4 = arith.constant 0 : index
    %c0_5 = arith.constant 0 : index
    %7 = vector.load %arg3[%c0_4, %c0_5] : memref<90x1xf32, #tpu.memory_space<vmem>>, vector<90x1xf32>
    %8 = vector.broadcast %7 : vector<90x1xf32> to vector<90x512xf32>
    %9 = arith.addf %6, %8 : vector<90x512xf32>
    %cst_6 = arith.constant 0.000000e+00 : f32
    %10 = vector.broadcast %cst_6 : f32 to vector<90x512xf32>
    %11 = arith.maximumf %9, %10 : vector<90x512xf32>
    %12 = arith.truncf %11 : vector<90x512xf32> to vector<90x512xbf16>
    %c0_7 = arith.constant 0 : index
    %c0_8 = arith.constant 0 : index
    %13 = vector.load %arg4[%c0_7, %c0_8] : memref<64x90xbf16, #tpu.memory_space<vmem>>, vector<64x90xbf16>
    %cst_9 = arith.constant dense<0.000000e+00> : vector<64x512xf32>
    %14 = tpu.matmul %13, %12, %cst_9 {dimension_numbers = #tpu.dot_dimension_numbers<[1], [0], [0], [1], [0, 0, 1, 1], [], []>} : vector<64x90xbf16>, vector<90x512xbf16>, vector<64x512xf32> -> vector<64x512xf32>
    %c0_10 = arith.constant 0 : index
    %c0_11 = arith.constant 0 : index
    %15 = vector.load %arg5[%c0_10, %c0_11] : memref<64x1xf32, #tpu.memory_space<vmem>>, vector<64x1xf32>
    %16 = vector.broadcast %15 : vector<64x1xf32> to vector<64x512xf32>
    %17 = arith.addf %14, %16 : vector<64x512xf32>
    %cst_12 = arith.constant 0.000000e+00 : f32
    %18 = vector.broadcast %cst_12 : f32 to vector<64x512xf32>
    %19 = arith.maximumf %17, %18 : vector<64x512xf32>
    %20 = arith.truncf %19 : vector<64x512xf32> to vector<64x512xbf16>
    %c0_13 = arith.constant 0 : index
    %c0_14 = arith.constant 0 : index
    %21 = vector.load %arg6[%c0_13, %c0_14] : memref<32x64xbf16, #tpu.memory_space<vmem>>, vector<32x64xbf16>
    %cst_15 = arith.constant dense<0.000000e+00> : vector<32x512xf32>
    %22 = tpu.matmul %21, %20, %cst_15 {dimension_numbers = #tpu.dot_dimension_numbers<[1], [0], [0], [1], [0, 0, 1, 1], [], []>} : vector<32x64xbf16>, vector<64x512xbf16>, vector<32x512xf32> -> vector<32x512xf32>
    %c0_16 = arith.constant 0 : index
    %c0_17 = arith.constant 0 : index
    %23 = vector.load %arg7[%c0_16, %c0_17] : memref<32x1xf32, #tpu.memory_space<vmem>>, vector<32x1xf32>
    %24 = vector.broadcast %23 : vector<32x1xf32> to vector<32x512xf32>
    %25 = arith.addf %22, %24 : vector<32x512xf32>
    %cst_18 = arith.constant 0.000000e+00 : f32
    %26 = vector.broadcast %cst_18 : f32 to vector<32x512xf32>
    %27 = arith.maximumf %25, %26 : vector<32x512xf32>
    %28 = arith.truncf %27 : vector<32x512xf32> to vector<32x512xbf16>
    %c0_19 = arith.constant 0 : index
    %c0_20 = arith.constant 0 : index
    %29 = vector.load %arg8[%c0_19, %c0_20] : memref<16x32xbf16, #tpu.memory_space<vmem>>, vector<16x32xbf16>
    %cst_21 = arith.constant dense<0.000000e+00> : vector<16x512xf32>
    %30 = tpu.matmul %29, %28, %cst_21 {dimension_numbers = #tpu.dot_dimension_numbers<[1], [0], [0], [1], [0, 0, 1, 1], [], []>} : vector<16x32xbf16>, vector<32x512xbf16>, vector<16x512xf32> -> vector<16x512xf32>
    %c0_22 = arith.constant 0 : index
    %c0_23 = arith.constant 0 : index
    %31 = vector.load %arg9[%c0_22, %c0_23] : memref<16x1xf32, #tpu.memory_space<vmem>>, vector<16x1xf32>
    %32 = vector.broadcast %31 : vector<16x1xf32> to vector<16x512xf32>
    %33 = arith.addf %30, %32 : vector<16x512xf32>
    %c0_24 = arith.constant 0 : index
    %c0_25 = arith.constant 0 : index
    %34 = vector.load %arg16[%c0_24, %c0_25] : memref<16x512xf32, #tpu.memory_space<vmem>>, vector<16x512xf32>
    tpu.vector_store %arg16[%c0_24, %c0_25], %33 {strides = array<i32>} : memref<16x512xf32, #tpu.memory_space<vmem>>, vector<16x512xf32>,
    %35 = arith.truncf %33 : vector<16x512xf32> to vector<16x512xbf16>
    %c0_26 = arith.constant 0 : index
    %c0_27 = arith.constant 0 : index
    %36 = vector.load %arg10[%c0_26, %c0_27] : memref<32x16xbf16, #tpu.memory_space<vmem>>, vector<32x16xbf16>
    %cst_28 = arith.constant dense<0.000000e+00> : vector<32x512xf32>
    %37 = tpu.matmul %36, %35, %cst_28 {dimension_numbers = #tpu.dot_dimension_numbers<[1], [0], [0], [1], [0, 0, 1, 1], [], []>} : vector<32x16xbf16>, vector<16x512xbf16>, vector<32x512xf32> -> vector<32x512xf32>
    %c0_29 = arith.constant 0 : index
    %c0_30 = arith.constant 0 : index
    %38 = vector.load %arg11[%c0_29, %c0_30] : memref<32x1xf32, #tpu.memory_space<vmem>>, vector<32x1xf32>
    %39 = vector.broadcast %38 : vector<32x1xf32> to vector<32x512xf32>
    %40 = arith.addf %37, %39 : vector<32x512xf32>
    %cst_31 = arith.constant 0.000000e+00 : f32
    %41 = vector.broadcast %cst_31 : f32 to vector<32x512xf32>
    %42 = arith.maximumf %40, %41 : vector<32x512xf32>
    %43 = arith.truncf %42 : vector<32x512xf32> to vector<32x512xbf16>
    %c0_32 = arith.constant 0 : index
    %c0_33 = arith.constant 0 : index
    %44 = vector.load %arg12[%c0_32, %c0_33] : memref<64x32xbf16, #tpu.memory_space<vmem>>, vector<64x32xbf16>
    %cst_34 = arith.constant dense<0.000000e+00> : vector<64x512xf32>
    %45 = tpu.matmul %44, %43, %cst_34 {dimension_numbers = #tpu.dot_dimension_numbers<[1], [0], [0], [1], [0, 0, 1, 1], [], []>} : vector<64x32xbf16>, vector<32x512xbf16>, vector<64x512xf32> -> vector<64x512xf32>
    %c0_35 = arith.constant 0 : index
    %c0_36 = arith.constant 0 : index
    %46 = vector.load %arg13[%c0_35, %c0_36] : memref<64x1xf32, #tpu.memory_space<vmem>>, vector<64x1xf32>
    %47 = vector.broadcast %46 : vector<64x1xf32> to vector<64x512xf32>
    %48 = arith.addf %45, %47 : vector<64x512xf32>
    %cst_37 = arith.constant 0.000000e+00 : f32
    %49 = vector.broadcast %cst_37 : f32 to vector<64x512xf32>
    %50 = arith.maximumf %48, %49 : vector<64x512xf32>
    %51 = arith.truncf %50 : vector<64x512xf32> to vector<64x512xbf16>
    %c0_38 = arith.constant 0 : index
    %c0_39 = arith.constant 0 : index
    %52 = vector.load %arg14[%c0_38, %c0_39] : memref<128x64xbf16, #tpu.memory_space<vmem>>, vector<128x64xbf16>
    %cst_40 = arith.constant dense<0.000000e+00> : vector<128x512xf32>
    %53 = tpu.matmul %52, %51, %cst_40 {dimension_numbers = #tpu.dot_dimension_numbers<[1], [0], [0], [1], [0, 0, 1, 1], [], []>} : vector<128x64xbf16>, vector<64x512xbf16>, vector<128x512xf32> -> vector<128x512xf32>
    %c0_41 = arith.constant 0 : index
    %c0_42 = arith.constant 0 : index
    %54 = vector.load %arg15[%c0_41, %c0_42] : memref<128x1xf32, #tpu.memory_space<vmem>>, vector<128x1xf32>
    %55 = vector.broadcast %54 : vector<128x1xf32> to vector<128x512xf32>
    %56 = arith.addf %53, %55 : vector<128x512xf32>
    %cst_43 = arith.constant 0.000000e+00 : f32
    %57 = vector.broadcast %cst_43 : f32 to vector<128x512xf32>
    %58 = arith.maximumf %56, %57 : vector<128x512xf32>
    %c0_44 = arith.constant 0 : index
    %c0_45 = arith.constant 0 : index
    %59 = vector.load %arg1[%c0_44, %c0_45] : memref<128x512xi8, #tpu.memory_space<vmem>>, vector<128x512xi8>
    %60 = arith.uitofp %59 : vector<128x512xi8> to vector<128x512xf32>
    %cst_46 = arith.constant 0.00392156886 : f32
    %61 = vector.broadcast %cst_46 : f32 to vector<128x512xf32>
    %62 = arith.mulf %60, %61 : vector<128x512xf32>
    %63 = arith.subf %58, %62 : vector<128x512xf32>
    %64 = arith.mulf %63, %63 : vector<128x512xf32>
    %65 = vector.shape_cast %64 : vector<128x512xf32> to vector<1x128x512xf32>
    %cst_47 = arith.constant dense<0.000000e+00> : vector<1xf32>
    %66 = vector.multi_reduction <add>, %65, %cst_47 [1, 2] : vector<1x128x512xf32> to vector<1xf32>
    %67 = vector.shape_cast %66 : vector<1xf32> to vector<1x1x1xf32>
    %68 = vector.extract %67[0, 0, 0] : f32 from vector<1x1x1xf32>
    %c0_48 = arith.constant 0 : index
    %c0_49 = arith.constant 0 : index
    %69 = memref.load %arg17[%c0_48, %c0_49] : memref<1x1xf32, #tpu.memory_space<smem>>
    memref.store %68, %arg17[%c0_48, %c0_49] : memref<1x1xf32, #tpu.memory_space<smem>>
    return
  }
  func.func @transform_0(%arg0: i32) -> (i32, i32) {
    %c0_i32 = arith.constant 0 : i32
    %c0_i32_0 = arith.constant 0 : i32
    return %c0_i32, %arg0 : i32, i32
  }
  func.func @transform_1(%arg0: i32) -> (i32, i32) {
    %c0_i32 = arith.constant 0 : i32
    %c0_i32_0 = arith.constant 0 : i32
    %c0_i32_1 = arith.constant 0 : i32
    return %c0_i32, %c0_i32_0 : i32, i32
  }
  func.func @transform_2(%arg0: i32) -> (i32, i32) {
    %c0_i32 = arith.constant 0 : i32
    %c0_i32_0 = arith.constant 0 : i32
    %c0_i32_1 = arith.constant 0 : i32
    return %c0_i32, %c0_i32_0 : i32, i32
  }
  func.func @transform_3(%arg0: i32) -> (i32, i32) {
    %c0_i32 = arith.constant 0 : i32
    %c0_i32_0 = arith.constant 0 : i32
    %c0_i32_1 = arith.constant 0 : i32
    return %c0_i32, %c0_i32_0 : i32, i32
  }
  func.func @transform_4(%arg0: i32) -> (i32, i32) {
    %c0_i32 = arith.constant 0 : i32
    %c0_i32_0 = arith.constant 0 : i32
    %c0_i32_1 = arith.constant 0 : i32
    return %c0_i32, %c0_i32_0 : i32, i32
  }
  func.func @transform_5(%arg0: i32) -> (i32, i32) {
    %c0_i32 = arith.constant 0 : i32
    %c0_i32_0 = arith.constant 0 : i32
    %c0_i32_1 = arith.constant 0 : i32
    return %c0_i32, %c0_i32_0 : i32, i32
  }
  func.func @transform_6(%arg0: i32) -> (i32, i32) {
    %c0_i32 = arith.constant 0 : i32
    %c0_i32_0 = arith.constant 0 : i32
    %c0_i32_1 = arith.constant 0 : i32
    return %c0_i32, %c0_i32_0 : i32, i32
  }
  func.func @transform_7(%arg0: i32) -> (i32, i32) {
    %c0_i32 = arith.constant 0 : i32
    %c0_i32_0 = arith.constant 0 : i32
    %c0_i32_1 = arith.constant 0 : i32
    return %c0_i32, %c0_i32_0 : i32, i32
  }
  func.func @transform_8(%arg0: i32) -> (i32, i32) {
    %c0_i32 = arith.constant 0 : i32
    %c0_i32_0 = arith.constant 0 : i32
    %c0_i32_1 = arith.constant 0 : i32
    return %c0_i32, %c0_i32_0 : i32, i32
  }
  func.func @transform_9(%arg0: i32) -> (i32, i32) {
    %c0_i32 = arith.constant 0 : i32
    %c0_i32_0 = arith.constant 0 : i32
    %c0_i32_1 = arith.constant 0 : i32
    return %c0_i32, %c0_i32_0 : i32, i32
  }
  func.func @transform_10(%arg0: i32) -> (i32, i32) {
    %c0_i32 = arith.constant 0 : i32
    %c0_i32_0 = arith.constant 0 : i32
    %c0_i32_1 = arith.constant 0 : i32
    return %c0_i32, %c0_i32_0 : i32, i32
  }
  func.func @transform_11(%arg0: i32) -> (i32, i32) {
    %c0_i32 = arith.constant 0 : i32
    %c0_i32_0 = arith.constant 0 : i32
    %c0_i32_1 = arith.constant 0 : i32
    return %c0_i32, %c0_i32_0 : i32, i32
  }
  func.func @transform_12(%arg0: i32) -> (i32, i32) {
    %c0_i32 = arith.constant 0 : i32
    %c0_i32_0 = arith.constant 0 : i32
    %c0_i32_1 = arith.constant 0 : i32
    return %c0_i32, %c0_i32_0 : i32, i32
  }
  func.func @transform_13(%arg0: i32) -> (i32, i32) {
    %c0_i32 = arith.constant 0 : i32
    %c0_i32_0 = arith.constant 0 : i32
    %c0_i32_1 = arith.constant 0 : i32
    return %c0_i32, %c0_i32_0 : i32, i32
  }
  func.func @transform_14(%arg0: i32) -> (i32, i32) {
    %c0_i32 = arith.constant 0 : i32
    %c0_i32_0 = arith.constant 0 : i32
    %c0_i32_1 = arith.constant 0 : i32
    return %c0_i32, %c0_i32_0 : i32, i32
  }
  func.func @transform_15(%arg0: i32) -> (i32, i32) {
    %c0_i32 = arith.constant 0 : i32
    %c0_i32_0 = arith.constant 0 : i32
    return %c0_i32, %arg0 : i32, i32
  }
  func.func @transform_16(%arg0: i32) -> (i32, i32) {
    %c0_i32 = arith.constant 0 : i32
    %c0_i32_0 = arith.constant 0 : i32
    return %arg0, %c0_i32 : i32, i32
  }
}

</mosaic_0001>

<bundles_post_ra>
// kernel: tpu_custom_call.1
= control target key start
LH: loop header
LB: loop body
LE: loop exit
PB: predicated region body
PF: predicated region fallthrough
CT: control target
= control target key end

     0   :  { %s3574_s0 = inlined_call_operand.vmem [shape: u8[128,512], index: 0, kind: input, shape index: {}]   ;;  %s3575_s1 = inlined_call_operand.vmem [shape: bf16[90,128], index: 1, kind: input, shape index: {}]   ;;  %s3576_s2 = inlined_call_operand.vmem [shape: f32[90,1], index: 2, kind: input, shape index: {}]   ;;  %s3577_s3 = inlined_call_operand.vmem [shape: bf16[64,90], index: 3, kind: input, shape index: {}]   ;;  %s3578_s4 = inlined_call_operand.vmem [shape: f32[64,1], index: 4, kind: input, shape index: {}]   ;;  %s3579_s5 = inlined_call_operand.vmem [shape: bf16[32,64], index: 5, kind: input, shape index: {}]   ;;  %s3580_s6 = inlined_call_operand.vmem [shape: f32[32,1], index: 6, kind: input, shape index: {}]   ;;  %s3581_s7 = inlined_call_operand.vmem [shape: bf16[16,32], index: 7, kind: input, shape index: {}]   ;;  %s3582_s8 = inlined_call_operand.vmem [shape: f32[16,1], index: 8, kind: input, shape index: {}]   ;;  %s3583_s9 = inlined_call_operand.vmem [shape: bf16[32,16], index: 9, kind: input, shape index: {}]   ;;  %s3584_s10 = inlined_call_operand.vmem [shape: f32[32,1], index: 10, kind: input, shape index: {}]   ;;  %s3585_s11 = inlined_call_operand.vmem [shape: bf16[64,32], index: 11, kind: input, shape index: {}]   ;;  %s3586_s12 = inlined_call_operand.vmem [shape: f32[64,1], index: 12, kind: input, shape index: {}]   ;;  %s3587_s13 = inlined_call_operand.vmem [shape: bf16[128,64], index: 13, kind: input, shape index: {}]   ;;  %s3588_s14 = inlined_call_operand.vmem [shape: f32[128,1], index: 14, kind: input, shape index: {}]   ;;  %s3589_s15 = inlined_call_operand.hbm [shape: f32[16,512], index: 15, kind: output, shape index: {0}]   ;;  %s3590_s16 = inlined_call_operand.hbm [shape: f32[1,1], index: 16, kind: output, shape index: {1}]  }
   0x1   :  { %3592 = sst [smem:[#allocation16_spill]] %s3574_s0 }
   0x2   :  { %22 = vsyncpa [#allocation3], 0  ;;  %s3593_s23 = sld [smem:[#allocation16_spill]]  ;;  %v2675_v10 = vmov 0   ;;  %v148_v17 = vld [vmem:[%s3576_s2] sm:$0xff]  ;;  %v149_v30 = vld [vmem:[%s3576_s2 + $0x8] sm:$0xff] }
   0x3   :  { %2610 = vset.pattern.permute.xlu0 %v2675_v10  ;;  %2611 = vset.pattern.permute.xlu1 %v2675_v10  ;;  %v150_v35 = vld [vmem:[%s3576_s2 + $0x10] sm:$0xff]  ;;  %v152_v42 = vld [vmem:[%s3576_s2 + $0x20] sm:$0xff]  ;;  %v151_v43 = vld [vmem:[%s3576_s2 + $0x18] sm:$0xff] }
   0x4   :  { %288 = vmatprep.mubr.bf16.mxu0 %v2675_v10  ;;  %381 = vmatprep.mubr.bf16.mxu1 %v2675_v10  ;;  %v154_v51 = vld [vmem:[%s3576_s2 + $0x30] sm:$0xff]  ;;  %v153_v52 = vld [vmem:[%s3576_s2 + $0x28] sm:$0xff]  ;;  %v156_v63 = vld [vmem:[%s3576_s2 + $0x40] sm:$0xff] }
   0x5   :  { %162 = vperm.xlu0 %2610, %v148_v17   ;;  %172 = vperm.xlu1 %2611, %v150_v35   ;;  %v525_v35 = vld [vmem:[%s3578_s4 + $0x18] sm:$0xff] }
   0x8   :  { %v57_v0 = vld [vmem:[%s3593_s23 + $0x8] sm:$0xff]  ;;  %v59_v1 = vld [vmem:[%s3593_s23 + $0x18] sm:$0xff]  ;;  %v56_v2 = vld [vmem:[%s3593_s23] sm:$0xff] }
   0x9   :  { %v73_v3 = vunpack.c.l.u8.bf16 %v57_v0  ;;  %v77_v4 = vunpack.c.h.u8.bf16 %v57_v0  ;;  %v75_v5 = vunpack.c.l.u8.bf16 %v59_v1  ;;  %v79_v6 = vunpack.c.h.u8.bf16 %v59_v1  ;;  %v58_v7 = vld [vmem:[%s3593_s23 + $0x10] sm:$0xff]  ;;  %v61_v8 = vld [vmem:[%s3593_s23 + $0x28] sm:$0xff]  ;;  %v63_v9 = vld [vmem:[%s3593_s23 + $0x38] sm:$0xff]  ;;  %167 = vperm.xlu0 %2610, %v149_v30   ;;  %177 = vperm.xlu1 %2611, %v151_v43  }
   0xa   :  { %v72_v11 = vunpack.c.l.u8.bf16 %v56_v2  ;;  %v76_v12 = vunpack.c.h.u8.bf16 %v56_v2  ;;  %v74_v13 = vunpack.c.l.u8.bf16 %v58_v7  ;;  %v78_v14 = vunpack.c.h.u8.bf16 %v58_v7  ;;  %v60_v15 = vld [vmem:[%s3593_s23 + $0x20] sm:$0xff]  ;;  %v62_v16 = vld [vmem:[%s3593_s23 + $0x30] sm:$0xff]  ;;  %v65_v36 = vld [vmem:[%s3593_s23 + $0x48] sm:$0xff] }
   0xb   :  { %v105_v18 = vmul.bf16 998325121, %v73_v3  ;;  %v109_v19 = vmul.bf16 998325121, %v77_v4  ;;  %v107_v20 = vmul.bf16 998325121, %v75_v5  ;;  %v81_v21 = vunpack.c.l.u8.bf16 %v61_v8 }
   0xc   :  { %v111_v22 = vmul.bf16 998325121, %v79_v6  ;;  %v104_v23 = vmul.bf16 998325121, %v72_v11  ;;  %v106_v24 = vmul.bf16 998325121, %v74_v13  ;;  %v83_v25 = vunpack.c.l.u8.bf16 %v63_v9 }
   0xd   :  { %256 = vmatprep.subr.bf16.mxu0 %v105_v18  ;;  %349 = vmatprep.subr.bf16.mxu1 %v107_v20  ;;  %v108_v26 = vmul.bf16 998325121, %v76_v12  ;;  %v110_v27 = vmul.bf16 998325121, %v78_v14  ;;  %v80_v28 = vunpack.c.l.u8.bf16 %v60_v15  ;;  %v82_v29 = vunpack.c.l.u8.bf16 %v62_v16  ;;  %v67_v37 = vld [vmem:[%s3593_s23 + $0x58] sm:$0xff]  ;;  %v64_v48 = vld [vmem:[%s3593_s23 + $0x40] sm:$0xff] }
   0xe   :  { %257 = vmatpush1.bf16.msra.mxu0 %v104_v23  ;;  %350 = vmatpush1.bf16.msra.mxu1 %v106_v24  ;;  %v113_v31 = vmul.bf16 998325121, %v81_v21  ;;  %v115_v32 = vmul.bf16 998325121, %v83_v25  ;;  %v85_v33 = vunpack.c.h.u8.bf16 %v61_v8  ;;  %v87_v34 = vunpack.c.h.u8.bf16 %v63_v9  ;;  %v66_v49 = vld [vmem:[%s3593_s23 + $0x50] sm:$0xff]  ;;  %v69_v60 = vld [vmem:[%s3593_s23 + $0x68] sm:$0xff] }
   0xf   :  { %258 = vmatprep.subr.bf16.mxu0 %v109_v19  ;;  %351 = vmatprep.subr.bf16.mxu1 %v111_v22  ;;  %v84_v38 = vunpack.c.h.u8.bf16 %v60_v15  ;;  %v112_v39 = vmul.bf16 998325121, %v80_v28  ;;  %v114_v40 = vmul.bf16 998325121, %v82_v29  ;;  %v86_v41 = vunpack.c.h.u8.bf16 %v62_v16  ;;  %v71_v61 = vld [vmem:[%s3593_s23 + $0x78] sm:$0xff]  ;;  %v68_v8 = vld [vmem:[%s3593_s23 + $0x60] sm:$0xff] }
  0x10   :  { %v117_v44 = vmul.bf16 998325121, %v85_v33  ;;  %v119_v45 = vmul.bf16 998325121, %v87_v34  ;;  %v89_v46 = vunpack.c.l.u8.bf16 %v65_v36  ;;  %v91_v47 = vunpack.c.l.u8.bf16 %v67_v37  ;;  %182 = vperm.xlu0 %2610, %v152_v42   ;;  %187 = vperm.xlu1 %2611, %v153_v52   ;;  %v155_v0 = vld [vmem:[%s3576_s2 + $0x38] sm:$0xff]  ;;  %v70_v9 = vld [vmem:[%s3593_s23 + $0x70] sm:$0xff] }
  0x11   :  { %v116_v50 = vmul.bf16 998325121, %v84_v38  ;;  %v118_v53 = vmul.bf16 998325121, %v86_v41  ;;  %v88_v54 = vunpack.c.l.u8.bf16 %v64_v48  ;;  %v90_v55 = vunpack.c.l.u8.bf16 %v66_v49  ;;  %v158_v12 = vld [vmem:[%s3576_s2 + $0x50] sm:$0xff]  ;;  %v157_v13 = vld [vmem:[%s3576_s2 + $0x48] sm:$0xff] }
  0x12   :  { %259 = vmatpush1.bf16.msra.mxu0 %v108_v26  ;;  %352 = vmatpush1.bf16.msra.mxu1 %v110_v27  ;;  %v93_v56 = vunpack.c.h.u8.bf16 %v65_v36  ;;  %v121_v57 = vmul.bf16 998325121, %v89_v46  ;;  %v123_v58 = vmul.bf16 998325121, %v91_v47  ;;  %v95_v59 = vunpack.c.h.u8.bf16 %v67_v37  ;;  %v522_v21 = vld [vmem:[%s3578_s4] sm:$0xff]  ;;  %v524_v29 = vld [vmem:[%s3578_s4 + $0x10] sm:$0xff] }
  0x13   :  { %260 = vmatprep.subr.bf16.mxu0 %v113_v31  ;;  %353 = vmatprep.subr.bf16.mxu1 %v115_v32  ;;  %v92_v62 = vunpack.c.h.u8.bf16 %v64_v48  ;;  %v120_v1 = vmul.bf16 998325121, %v88_v54  ;;  %v122_v2 = vmul.bf16 998325121, %v90_v55  ;;  %v94_v4 = vunpack.c.h.u8.bf16 %v66_v49  ;;  %v159_v22 = vld [vmem:[%s3576_s2 + $0x58] sm:$0x3] }
  0x14   :  { %192 = vperm.xlu0 %2610, %v154_v51   ;;  %v125_v3 = vmul.bf16 998325121, %v93_v56  ;;  %v127_v5 = vmul.bf16 998325121, %v95_v59  ;;  %v97_v6 = vunpack.c.l.u8.bf16 %v69_v60  ;;  %v99_v7 = vunpack.c.l.u8.bf16 %v71_v61  ;;  %197 = vperm.xlu1 %2611, %v155_v0   ;;  %v523_v30 = vld [vmem:[%s3578_s4 + $0x8] sm:$0xff]  ;;  %v2612_v33 = vld [vmem:[%s3575_s1] sm:$0xff]  }
  0x15   :  { %v124_v11 = vmul.bf16 998325121, %v92_v62  ;;  %v126_v14 = vmul.bf16 998325121, %v94_v4  ;;  %v96_v15 = vunpack.c.l.u8.bf16 %v68_v8  ;;  %v98_v16 = vunpack.c.l.u8.bf16 %v70_v9  ;;  %v526_v34 = vld [vmem:[%s3578_s4 + $0x20] sm:$0xff]  ;;  %v528_v36 = vld [vmem:[%s3578_s4 + $0x30] sm:$0xff] }
  0x16   :  { %261 = vmatpush1.bf16.msra.mxu0 %v112_v39  ;;  %354 = vmatpush1.bf16.msra.mxu1 %v114_v40  ;;  %v129_v17 = vmul.bf16 998325121, %v97_v6  ;;  %v131_v18 = vmul.bf16 998325121, %v99_v7  ;;  %v101_v19 = vunpack.c.h.u8.bf16 %v69_v60  ;;  %v103_v20 = vunpack.c.h.u8.bf16 %v71_v61  ;;  %v527_v37 = vld [vmem:[%s3578_s4 + $0x28] sm:$0xff]  ;;  %v814_v39 = vld [vmem:[%s3580_s6] sm:$0xff] }
  0x17   :  { %262 = vmatprep.subr.bf16.mxu0 %v117_v44  ;;  %355 = vmatprep.subr.bf16.mxu1 %v119_v45  ;;  %v128_v23 = vmul.bf16 998325121, %v96_v15  ;;  %v130_v24 = vmul.bf16 998325121, %v98_v16  ;;  %v100_v25 = vunpack.c.h.u8.bf16 %v68_v8  ;;  %v102_v26 = vunpack.c.h.u8.bf16 %v70_v9  ;;  %v2613_v38 = vld [vmem:[%s3575_s1 + $0x8] sm:$0xff]   ;;  %v529_v40 = vld [vmem:[%s3578_s4 + $0x38] sm:$0xff] }
  0x18   :  { %202 = vperm.xlu0 %2610, %v156_v63   ;;  %207 = vperm.xlu1 %2611, %v157_v13   ;;  %v133_v27 = vmul.bf16 998325121, %v101_v19  ;;  %v135_v28 = vmul.bf16 998325121, %v103_v20  ;;  %v816_v41 = vld [vmem:[%s3580_s6 + $0x10] sm:$0xff]  ;;  %v815_v42 = vld [vmem:[%s3580_s6 + $0x8] sm:$0xff] }
  0x19   :  { %v132_v31 = vmul.bf16 998325121, %v100_v25  ;;  %v134_v32 = vmul.bf16 998325121, %v102_v26  ;;  %v2614_v43 = vld [vmem:[%s3575_s1 + $0x10] sm:$0xff]   ;;  %v987_v44 = vld [vmem:[%s3582_s8] sm:$0xff] }
  0x1a   :  { %263 = vmatpush1.bf16.msra.mxu0 %v116_v50  ;;  %356 = vmatpush1.bf16.msra.mxu1 %v118_v53  ;;  %v817_v45 = vld [vmem:[%s3580_s6 + $0x18] sm:$0xff] }
  0x1b   :  { %264 = vmatprep.subr.bf16.mxu0 %v121_v57  ;;  %357 = vmatprep.subr.bf16.mxu1 %v123_v58 }
  0x1c   :  { %212 = vperm.xlu0 %2610, %v158_v12   ;;  %217 = vperm.xlu1 %2611, %v159_v22  }
  0x1e   :  { %265 = vmatpush1.bf16.msra.mxu0 %v120_v1  ;;  %358 = vmatpush1.bf16.msra.mxu1 %v122_v2 }
  0x1f   :  { %266 = vmatprep.subr.bf16.mxu0 %v125_v3  ;;  %359 = vmatprep.subr.bf16.mxu1 %v127_v5 }
  0x20   :  { %532 = vperm.xlu0 %2610, %v522_v21   ;;  %537 = vperm.xlu1 %2611, %v523_v30  }
  0x22   :  { %267 = vmatpush1.bf16.msra.mxu0 %v124_v11  ;;  %360 = vmatpush1.bf16.msra.mxu1 %v126_v14 }
  0x23   :  { %268 = vmatprep.subr.bf16.mxu0 %v129_v17  ;;  %361 = vmatprep.subr.bf16.mxu1 %v131_v18 }
  0x24   :  { %542 = vperm.xlu0 %2610, %v524_v29   ;;  %547 = vperm.xlu1 %2611, %v525_v35  }
  0x26   :  { %269 = vmatpush1.bf16.msra.mxu0 %v128_v23  ;;  %362 = vmatpush1.bf16.msra.mxu1 %v130_v24 }
  0x27   :  { %270 = vmatprep.subr.bf16.mxu0 %v133_v27  ;;  %363 = vmatprep.subr.bf16.mxu1 %v135_v28 }
  0x28   :  { %552 = vperm.xlu0 %2610, %v526_v34   ;;  %557 = vperm.xlu1 %2611, %v527_v37  }
  0x2a   :  { %271 = vmatpush1.bf16.msra.mxu0 %v132_v31  ;;  %364 = vmatpush1.bf16.msra.mxu1 %v134_v32 }
  0x2c   :  { %562 = vperm.xlu0 %2610, %v528_v36   ;;  %567 = vperm.xlu1 %2611, %v529_v40  }
  0x2d   :  { %289 = vmatmul.mubr.bf16.vlgmr.msra.gmra.mrb[0].mxu0 %v2612_v33  ;;  %382 = vmatmul.mubr.bf16.vlgmr.msra.gmra.mrb[0].mxu1 %v2612_v33 }
  0x2e   :  { %298 = vmatprep.mubr.bf16.mxu0 %v2675_v10  ;;  %391 = vmatprep.mubr.bf16.mxu1 %v2675_v10 }
  0x30   :  { %820 = vperm.xlu0 %2610, %v814_v39   ;;  %825 = vperm.xlu1 %2611, %v815_v42  }
  0x34   :  { %830 = vperm.xlu0 %2610, %v816_v41   ;;  %835 = vperm.xlu1 %2611, %v817_v45  }
  0x35   :  { %299 = vmatmul.mubr.bf16.gmra.mrb[4].mxu0 %v2613_v38  ;;  %392 = vmatmul.mubr.bf16.gmra.mrb[4].mxu1 %v2613_v38 }
  0x36   :  { %308 = vmatprep.mubr.bf16.mxu0 %v2675_v10  ;;  %401 = vmatprep.mubr.bf16.mxu1 %v2675_v10 }
  0x38   :  { %991 = vperm.xlu0 %2610, %v987_v44  }
  0x39   :  { %23 = vsyncpa [#allocation4], 0  ;;  %v1110_v46 = vld [vmem:[%s3584_s10] sm:$0xff]  ;;  %v988_v47 = vld [vmem:[%s3582_s8 + $0x8] sm:$0xff]  ;;  %vm603_vm0 = vcmask 1044480   ;;  %vm590_vm1 = vcmask 736256  }
  0x3a   :  { %996 = vperm.xlu1 %2611, %v988_v47   ;;  %v2615_v48 = vld [vmem:[%s3575_s1 + $0x18] sm:$0xff]   ;;  %v1112_v49 = vld [vmem:[%s3584_s10 + $0x10] sm:$0xff]  ;;  %v1111_v50 = vld [vmem:[%s3584_s10 + $0x8] sm:$0xff]  ;;  %vm848_vm2 = vcmask 523264   ;;  %vm1004_vm3 = vcmask 261120   ;;  %vm1144_vm4 = vcmask 130048  }
  0x3b   :  { %v1289_v51 = vld [vmem:[%s3586_s12] sm:$0xff]  ;;  %v1113_v52 = vld [vmem:[%s3584_s10 + $0x18] sm:$0xff]  ;;  %v1291_v54 = vld [vmem:[%s3586_s12 + $0x10] sm:$0xff] }
  0x3c   :  { %1116 = vperm.xlu0 %2610, %v1110_v46   ;;  %v2616_v53 = vld [vmem:[%s3575_s1 + $0x20] sm:$0xff]   ;;  %v1290_v55 = vld [vmem:[%s3586_s12 + $0x8] sm:$0xff]  ;;  %v1292_v57 = vld [vmem:[%s3586_s12 + $0x18] sm:$0xff] }
  0x3d   :  { %309 = vmatmul.mubr.bf16.gmra.mrb[8].mxu0 %v2614_v43  ;;  %402 = vmatmul.mubr.bf16.gmra.mrb[8].mxu1 %v2614_v43  ;;  %v1293_v56 = vld [vmem:[%s3586_s12 + $0x20] sm:$0xff]  ;;  %v2617_v58 = vld [vmem:[%s3575_s1 + $0x28] sm:$0x1f]   ;;  %v1295_v59 = vld [vmem:[%s3586_s12 + $0x30] sm:$0xff] }
  0x3e   :  { %318 = vmatprep.mubr.bf16.mxu0 %v2675_v10  ;;  %411 = vmatprep.mubr.bf16.mxu1 %v2675_v10  ;;  %v1294_v60 = vld [vmem:[%s3586_s12 + $0x28] sm:$0xff]  ;;  %v1579_v61 = vld [vmem:[%s3588_s14] sm:$0xff]  ;;  %v1296_v62 = vld [vmem:[%s3586_s12 + $0x38] sm:$0xff] }
  0x3f   :  { %1121 = vperm.xlu1 %2611, %v1111_v50   ;;  %v1581_v63 = vld [vmem:[%s3588_s14 + $0x10] sm:$0xff]  ;;  %v1580_v0 = vld [vmem:[%s3588_s14 + $0x8] sm:$0xff]  ;;  %v1583_v1 = vld [vmem:[%s3588_s14 + $0x20] sm:$0xff] }
  0x40   :  { %1126 = vperm.xlu0 %2610, %v1112_v49   ;;  %v1582_v2 = vld [vmem:[%s3588_s14 + $0x18] sm:$0xff]  ;;  %v1585_v3 = vld [vmem:[%s3588_s14 + $0x30] sm:$0xff]  ;;  %v1584_v4 = vld [vmem:[%s3588_s14 + $0x28] sm:$0xff] }
  0x41   :  { %v1587_v5 = vld [vmem:[%s3588_s14 + $0x40] sm:$0xff]  ;;  %v1586_v6 = vld [vmem:[%s3588_s14 + $0x38] sm:$0xff]  ;;  %v1589_v7 = vld [vmem:[%s3588_s14 + $0x50] sm:$0xff] }
  0x42   :  { %v1588_v8 = vld [vmem:[%s3588_s14 + $0x48] sm:$0xff]  ;;  %v1591_v9 = vld [vmem:[%s3588_s14 + $0x60] sm:$0xff]  ;;  %v1590_v11 = vld [vmem:[%s3588_s14 + $0x58] sm:$0xff] }
  0x43   :  { %1131 = vperm.xlu1 %2611, %v1113_v52   ;;  %v1593_v12 = vld [vmem:[%s3588_s14 + $0x70] sm:$0xff]  ;;  %v1592_v13 = vld [vmem:[%s3588_s14 + $0x68] sm:$0xff]  ;;  %v1594_v14 = vld [vmem:[%s3588_s14 + $0x78] sm:$0xff] }
  0x44   :  { %1299 = vperm.xlu0 %2610, %v1289_v51  }
  0x45   :  { %319 = vmatmul.mubr.bf16.gmra.mrb[12].mxu0 %v2615_v48  ;;  %412 = vmatmul.mubr.bf16.gmra.mrb[12].mxu1 %v2615_v48 }
  0x46   :  { %328 = vmatprep.mubr.bf16.mxu0 %v2675_v10  ;;  %421 = vmatprep.mubr.bf16.mxu1 %v2675_v10 }
  0x47   :  { %1304 = vperm.xlu1 %2611, %v1290_v55  }
  0x48   :  { %1309 = vperm.xlu0 %2610, %v1291_v54  }
  0x4b   :  { %1314 = vperm.xlu1 %2611, %v1292_v57  }
  0x4c   :  { %1319 = vperm.xlu0 %2610, %v1293_v56  }
  0x4d   :  { %329 = vmatmul.mubr.bf16.gmra.mrb[16].mxu0 %v2616_v53  ;;  %422 = vmatmul.mubr.bf16.gmra.mrb[16].mxu1 %v2616_v53 }
  0x4e   :  { %338 = vmatprep.mubr.bf16.mxu0 %v2675_v10  ;;  %431 = vmatprep.mubr.bf16.mxu1 %v2675_v10 }
  0x4f   :  { %1324 = vperm.xlu1 %2611, %v1294_v60  }
  0x50   :  { %1329 = vperm.xlu0 %2610, %v1295_v59  }
  0x53   :  { %1334 = vperm.xlu1 %2611, %v1296_v62  }
  0x54   :  { %1597 = vperm.xlu0 %2610, %v1579_v61  }
  0x55   :  { %339 = vmatmul.mubr.bf16.gmra.mrb[20].mxu0 %v2617_v58  ;;  %432 = vmatmul.mubr.bf16.gmra.mrb[20].mxu1 %v2617_v58 }
  0x56   :  { %648 = vmatprep.mubr.bf16.mxu0 %v2675_v10  ;;  %721 = vmatprep.mubr.bf16.mxu1 %v2675_v10 }
  0x57   :  { %1602 = vperm.xlu1 %2611, %v1580_v0  }
  0x58   :  { %1607 = vperm.xlu0 %2610, %v1581_v63  }
  0x5b   :  { %1612 = vperm.xlu1 %2611, %v1582_v2  }
  0x5c   :  { %1617 = vperm.xlu0 %2610, %v1583_v1  }
  0x5f   :  { %1622 = vperm.xlu1 %2611, %v1584_v4  }
  0x60   :  { %1627 = vperm.xlu0 %2610, %v1585_v3  }
  0x63   :  { %1632 = vperm.xlu1 %2611, %v1586_v6  }
  0x64   :  { %1637 = vperm.xlu0 %2610, %v1587_v5  }
  0x67   :  { %1642 = vperm.xlu1 %2611, %v1588_v8  }
  0x68   :  { %1647 = vperm.xlu0 %2610, %v1589_v7  }
  0x6b   :  { %1652 = vperm.xlu1 %2611, %v1590_v11  }
  0x6c   :  { %1657 = vperm.xlu0 %2610, %v1591_v9  }
  0x6f   :  { %1662 = vperm.xlu1 %2611, %v1592_v13  }
  0x70   :  { %1667 = vperm.xlu0 %2610, %v1593_v12  }
  0x73   :  { %1672 = vperm.xlu1 %2611, %v1594_v14  }
  0x84   :  { %v163_v15 = vpop.permute.xlu0 %162  ;;  %v173_v17 = vpop.permute.xlu1 %172 }
  0x88   :  { %v168_v16 = vpop.permute.xlu0 %167  ;;  %v178_v42 = vpop.permute.xlu1 %177 }
  0x8f   :  { %v183_v7 = vpop.permute.xlu0 %182  ;;  %v188_v8 = vpop.permute.xlu1 %187 }
 0x100   :  { %v290_v18 = vpop.f32.mrb[0].mxu0  ;;  %v383_v19 = vpop.f32.mrb[0].mxu1 }
 0x101   :  { %v291_v20 = vadd.f32 %v290_v18, %v163_v15  ;;  %v384_v21 = vadd.f32 %v383_v19, %v163_v15  ;;  %v292_v22 = vpop.f32.mrb[1].mxu0  ;;  %v385_v23 = vpop.f32.mrb[1].mxu1 }
 0x102   :  { %v293_v24 = vadd.f32 %v292_v22, %v163_v15  ;;  %v386_v25 = vadd.f32 %v385_v23, %v163_v15  ;;  %v294_v26 = vpop.f32.mrb[2].mxu0  ;;  %v387_v27 = vpop.f32.mrb[2].mxu1 }
 0x103   :  { %v444_v28 = vmax.f32 %v384_v21, 0.0  ;;  %v295_v29 = vadd.f32 %v294_v26, %v168_v16  ;;  %v388_v30 = vadd.f32 %v387_v27, %v168_v16  ;;  %v296_v31 = vpop.f32.mrb[3].mxu0  ;;  %v389_v32 = vpop.f32.mrb[3].mxu1  ;;  %v442_v36 = vmax.f32 %v291_v20, 0.0 }
 0x104   :  { %v445_v33 = vmax.f32 %v386_v25, 0.0  ;;  %v297_v34 = vadd.f32 %v296_v31, %v168_v16  ;;  %v390_v35 = vadd.f32 %v389_v32, %v168_v16  ;;  %v443_v39 = vmax.f32 %v293_v24, 0.0 }
 0x105   :  { %v446_v37 = vmax.f32 %v295_v29, 0.0  ;;  %v448_v38 = vmax.f32 %v388_v30, 0.0 }
 0x106   :  { %v447_v40 = vmax.f32 %v297_v34, 0.0  ;;  %v449_v41 = vmax.f32 %v390_v35, 0.0 }
 0x107   :  { %v490_v43 = vpack.c.bf16 %v446_v37, %v442_v36  ;;  %v492_v44 = vpack.c.bf16 %v448_v38, %v444_v28  ;;  %v193_v38 = vpop.permute.xlu0 %192 }
 0x108   :  { %v491_v45 = vpack.c.bf16 %v447_v40, %v443_v39  ;;  %v493_v46 = vpack.c.bf16 %v449_v41, %v445_v33  ;;  %v300_v47 = vpop.f32.mrb[4].mxu0  ;;  %v393_v48 = vpop.f32.mrb[4].mxu1 }
 0x109   :  { %v301_v49 = vadd.f32 %v300_v47, %v173_v17  ;;  %v394_v50 = vadd.f32 %v393_v48, %v173_v17  ;;  %v302_v51 = vpop.f32.mrb[5].mxu0  ;;  %v395_v52 = vpop.f32.mrb[5].mxu1 }
 0x10a   :  { %v303_v53 = vadd.f32 %v302_v51, %v173_v17  ;;  %v396_v54 = vadd.f32 %v395_v52, %v173_v17  ;;  %v304_v55 = vpop.f32.mrb[6].mxu0  ;;  %v397_v56 = vpop.f32.mrb[6].mxu1  ;;  %616 = vmatprep.subr.bf16.mxu0 %v491_v45  ;;  %689 = vmatprep.subr.bf16.mxu1 %v493_v46 }
 0x10b   :  { %v452_v57 = vmax.f32 %v394_v50, 0.0  ;;  %v305_v58 = vadd.f32 %v304_v55, %v178_v42  ;;  %v398_v59 = vadd.f32 %v397_v56, %v178_v42  ;;  %v306_v60 = vpop.f32.mrb[7].mxu0  ;;  %v399_v61 = vpop.f32.mrb[7].mxu1  ;;  %617 = vmatpush1.bf16.msra.mxu0 %v490_v43  ;;  %690 = vmatpush1.bf16.msra.mxu1 %v492_v44  ;;  %v450_v1 = vmax.f32 %v301_v49, 0.0 }
 0x10c   :  { %v453_v62 = vmax.f32 %v396_v54, 0.0  ;;  %v307_v63 = vadd.f32 %v306_v60, %v178_v42  ;;  %v400_v0 = vadd.f32 %v399_v61, %v178_v42  ;;  %v451_v4 = vmax.f32 %v303_v53, 0.0  ;;  %v198_v39 = vpop.permute.xlu1 %197 }
 0x10d   :  { %v454_v2 = vmax.f32 %v305_v58, 0.0  ;;  %v456_v3 = vmax.f32 %v398_v59, 0.0 }
 0x10e   :  { %v455_v5 = vmax.f32 %v307_v63, 0.0  ;;  %v457_v6 = vmax.f32 %v400_v0, 0.0 }
 0x10f   :  { %v494_v9 = vpack.c.bf16 %v454_v2, %v450_v1  ;;  %v496_v11 = vpack.c.bf16 %v456_v3, %v452_v57 }
 0x110   :  { %v495_v12 = vpack.c.bf16 %v455_v5, %v451_v4  ;;  %v497_v13 = vpack.c.bf16 %v457_v6, %v453_v62  ;;  %v310_v14 = vpop.f32.mrb[8].mxu0  ;;  %v403_v15 = vpop.f32.mrb[8].mxu1 }
 0x111   :  { %v311_v16 = vadd.f32 %v310_v14, %v183_v7  ;;  %v404_v17 = vadd.f32 %v403_v15, %v183_v7  ;;  %v312_v18 = vpop.f32.mrb[9].mxu0  ;;  %v405_v19 = vpop.f32.mrb[9].mxu1 }
 0x112   :  { %v313_v20 = vadd.f32 %v312_v18, %v183_v7  ;;  %v406_v21 = vadd.f32 %v405_v19, %v183_v7  ;;  %v314_v22 = vpop.f32.mrb[10].mxu0  ;;  %v407_v23 = vpop.f32.mrb[10].mxu1  ;;  %618 = vmatprep.subr.bf16.mxu0 %v495_v12  ;;  %691 = vmatprep.subr.bf16.mxu1 %v497_v13 }
 0x113   :  { %v460_v24 = vmax.f32 %v404_v17, 0.0  ;;  %v315_v25 = vadd.f32 %v314_v22, %v188_v8  ;;  %v408_v26 = vadd.f32 %v407_v23, %v188_v8  ;;  %v316_v27 = vpop.f32.mrb[11].mxu0  ;;  %v409_v28 = vpop.f32.mrb[11].mxu1  ;;  %619 = vmatpush1.bf16.msra.mxu0 %v494_v9  ;;  %692 = vmatpush1.bf16.msra.mxu1 %v496_v11  ;;  %v458_v32 = vmax.f32 %v311_v16, 0.0 }
 0x114   :  { %v461_v29 = vmax.f32 %v406_v21, 0.0  ;;  %v317_v30 = vadd.f32 %v316_v27, %v188_v8  ;;  %v410_v31 = vadd.f32 %v409_v28, %v188_v8  ;;  %v459_v35 = vmax.f32 %v313_v20, 0.0  ;;  %v203_v4 = vpop.permute.xlu0 %202  ;;  %v208_v5 = vpop.permute.xlu1 %207 }
 0x115   :  { %v462_v33 = vmax.f32 %v315_v25, 0.0  ;;  %v464_v34 = vmax.f32 %v408_v26, 0.0 }
 0x116   :  { %v463_v36 = vmax.f32 %v317_v30, 0.0  ;;  %v465_v37 = vmax.f32 %v410_v31, 0.0 }
 0x117   :  { %v498_v40 = vpack.c.bf16 %v462_v33, %v458_v32  ;;  %v500_v41 = vpack.c.bf16 %v464_v34, %v460_v24 }
 0x118   :  { %v499_v42 = vpack.c.bf16 %v463_v36, %v459_v35  ;;  %v501_v43 = vpack.c.bf16 %v465_v37, %v461_v29  ;;  %v320_v44 = vpop.f32.mrb[12].mxu0  ;;  %v413_v45 = vpop.f32.mrb[12].mxu1 }
 0x119   :  { %v321_v46 = vadd.f32 %v320_v44, %v193_v38  ;;  %v414_v47 = vadd.f32 %v413_v45, %v193_v38  ;;  %v322_v48 = vpop.f32.mrb[13].mxu0  ;;  %v415_v49 = vpop.f32.mrb[13].mxu1 }
 0x11a   :  { %v323_v50 = vadd.f32 %v322_v48, %v193_v38  ;;  %v416_v51 = vadd.f32 %v415_v49, %v193_v38  ;;  %v324_v52 = vpop.f32.mrb[14].mxu0  ;;  %v417_v53 = vpop.f32.mrb[14].mxu1  ;;  %620 = vmatprep.subr.bf16.mxu0 %v499_v42  ;;  %693 = vmatprep.subr.bf16.mxu1 %v501_v43 }
 0x11b   :  { %v325_v54 = vadd.f32 %v324_v52, %v198_v39  ;;  %v418_v55 = vadd.f32 %v417_v53, %v198_v39  ;;  %v326_v56 = vpop.f32.mrb[15].mxu0  ;;  %v419_v57 = vpop.f32.mrb[15].mxu1  ;;  %621 = vmatpush1.bf16.msra.mxu0 %v498_v40  ;;  %694 = vmatpush1.bf16.msra.mxu1 %v500_v41  ;;  %v466_v60 = vmax.f32 %v321_v46, 0.0  ;;  %v468_v61 = vmax.f32 %v414_v47, 0.0 }
 0x11c   :  { %v327_v58 = vadd.f32 %v326_v56, %v198_v39  ;;  %v420_v59 = vadd.f32 %v419_v57, %v198_v39  ;;  %v467_v0 = vmax.f32 %v323_v50, 0.0  ;;  %v469_v1 = vmax.f32 %v416_v51, 0.0  ;;  %v213_v35 = vpop.permute.xlu0 %212  ;;  %v218_v36 = vpop.permute.xlu1 %217 }
 0x11d   :  { %v470_v62 = vmax.f32 %v325_v54, 0.0  ;;  %v472_v63 = vmax.f32 %v418_v55, 0.0 }
 0x11e   :  { %v471_v2 = vmax.f32 %v327_v58, 0.0  ;;  %v473_v3 = vmax.f32 %v420_v59, 0.0 }
 0x11f   :  { %v502_v6 = vpack.c.bf16 %v470_v62, %v466_v60  ;;  %v504_v7 = vpack.c.bf16 %v472_v63, %v468_v61 }
 0x120   :  { %v503_v8 = vpack.c.bf16 %v471_v2, %v467_v0  ;;  %v505_v9 = vpack.c.bf16 %v473_v3, %v469_v1  ;;  %v330_v11 = vpop.f32.mrb[16].mxu0  ;;  %v423_v12 = vpop.f32.mrb[16].mxu1 }
 0x121   :  { %v331_v13 = vadd.f32 %v330_v11, %v203_v4  ;;  %v424_v14 = vadd.f32 %v423_v12, %v203_v4  ;;  %v332_v15 = vpop.f32.mrb[17].mxu0  ;;  %v425_v16 = vpop.f32.mrb[17].mxu1  ;;  %v2621_v11 = vld [vmem:[%s3577_s3 + $0x18] sm:$0xff]  }
 0x122   :  { %v333_v17 = vadd.f32 %v332_v15, %v203_v4  ;;  %v426_v18 = vadd.f32 %v425_v16, %v203_v4  ;;  %v334_v19 = vpop.f32.mrb[18].mxu0  ;;  %v427_v20 = vpop.f32.mrb[18].mxu1  ;;  %622 = vmatprep.subr.bf16.mxu0 %v503_v8  ;;  %695 = vmatprep.subr.bf16.mxu1 %v505_v9  ;;  %v2619_v8 = vld [vmem:[%s3577_s3 + $0x8] sm:$0xff]   ;;  %v2620_v9 = vld [vmem:[%s3577_s3 + $0x10] sm:$0xff]  }
 0x123   :  { %v335_v21 = vadd.f32 %v334_v19, %v208_v5  ;;  %v428_v22 = vadd.f32 %v427_v20, %v208_v5  ;;  %v336_v23 = vpop.f32.mrb[19].mxu0  ;;  %v429_v24 = vpop.f32.mrb[19].mxu1  ;;  %623 = vmatpush1.bf16.msra.mxu0 %v502_v6  ;;  %696 = vmatpush1.bf16.msra.mxu1 %v504_v7  ;;  %v474_v27 = vmax.f32 %v331_v13, 0.0  ;;  %v476_v28 = vmax.f32 %v424_v14, 0.0  ;;  %v2618_v7 = vld [vmem:[%s3577_s3] sm:$0xff]  }
 0x124   :  { %v337_v25 = vadd.f32 %v336_v23, %v208_v5  ;;  %v430_v26 = vadd.f32 %v429_v24, %v208_v5  ;;  %v475_v31 = vmax.f32 %v333_v17, 0.0  ;;  %v477_v32 = vmax.f32 %v426_v18, 0.0  ;;  %v533_v12 = vpop.permute.xlu0 %532  ;;  %v538_v13 = vpop.permute.xlu1 %537 }
 0x125   :  { %v478_v29 = vmax.f32 %v335_v21, 0.0  ;;  %v480_v30 = vmax.f32 %v428_v22, 0.0 }
 0x126   :  { %v479_v33 = vmax.f32 %v337_v25, 0.0  ;;  %v481_v34 = vmax.f32 %v430_v26, 0.0 }
 0x127   :  { %v506_v37 = vpack.c.bf16 %v478_v29, %v474_v27  ;;  %v508_v38 = vpack.c.bf16 %v480_v30, %v476_v28 }
 0x128   :  { %v507_v39 = vpack.c.bf16 %v479_v33, %v475_v31  ;;  %v509_v40 = vpack.c.bf16 %v481_v34, %v477_v32  ;;  %v340_v41 = vpop.f32.mrb[20].mxu0  ;;  %v433_v42 = vpop.f32.mrb[20].mxu1 }
 0x129   :  { %v341_v43 = vadd.f32 %v340_v41, %v213_v35  ;;  %v434_v44 = vadd.f32 %v433_v42, %v213_v35  ;;  %v342_v45 = vpop.f32.mrb[21].mxu0  ;;  %v435_v46 = vpop.f32.mrb[21].mxu1 }
 0x12a   :  { %v343_v47 = vadd.f32 %v342_v45, %v213_v35  ;;  %v436_v48 = vadd.f32 %v435_v46, %v213_v35  ;;  %v344_v49 = vpop.f32.mrb[22].mxu0  ;;  %v437_v50 = vpop.f32.mrb[22].mxu1  ;;  %624 = vmatprep.subr.bf16.mxu0 %v507_v39  ;;  %697 = vmatprep.subr.bf16.mxu1 %v509_v40 }
 0x12b   :  { %v345_v51 = vadd.f32 %v344_v49, %v218_v36  ;;  %v438_v52 = vadd.f32 %v437_v50, %v218_v36  ;;  %v346_v53 = vpop.f32.mrb[23].mxu0  ;;  %v439_v54 = vpop.f32.mrb[23].mxu1  ;;  %625 = vmatpush1.bf16.msra.mxu0 %v506_v37  ;;  %698 = vmatpush1.bf16.msra.mxu1 %v508_v38  ;;  %v482_v57 = vmax.f32 %v341_v43, 0.0  ;;  %v484_v58 = vmax.f32 %v434_v44, 0.0 }
 0x12c   :  { %v347_v55 = vadd.f32 %v346_v53, %v218_v36  ;;  %v440_v56 = vadd.f32 %v439_v54, %v218_v36  ;;  %v483_v61 = vmax.f32 %v343_v47, 0.0  ;;  %v485_v62 = vmax.f32 %v436_v48, 0.0  ;;  %v543_v38 = vpop.permute.xlu0 %542  ;;  %v548_v39 = vpop.permute.xlu1 %547 }
 0x12d   :  { %v486_v59 = vmax.f32 %v345_v51, 0.0  ;;  %v488_v60 = vmax.f32 %v438_v52, 0.0 }
 0x12e   :  { %v487_v63 = vmax.f32 %v347_v55, 0.0  ;;  %v489_v0 = vmax.f32 %v440_v56, 0.0 }
 0x12f   :  { %v510_v1 = vpack.c.bf16 %v486_v59, %v482_v57  ;;  %v512_v2 = vpack.c.bf16 %v488_v60, %v484_v58 }
 0x130   :  { %v511_v3 = vpack.c.bf16 %v487_v63, %v483_v61  ;;  %v513_v4 = vpack.c.bf16 %v489_v0, %v485_v62 }
 0x131   :  { %v605_v5 = vsel %vm603_vm0, %v510_v1, 0  ;;  %v611_v6 = vsel %vm603_vm0, %v512_v2, 0 }
 0x132   :  { %2542 = vmatprep.subr.msk.bf16.mxu0 %vm603_vm0, %v511_v3  ;;  %2547 = vmatprep.subr.msk.bf16.mxu1 %vm603_vm0, %v513_v4  ;;  %v553_v4 = vpop.permute.xlu0 %552 }
 0x133   :  { %627 = vmatpush1.bf16.msra.mxu0 %v605_v5  ;;  %700 = vmatpush1.bf16.msra.mxu1 %v611_v6  ;;  %v558_v5 = vpop.permute.xlu1 %557 }
 0x136   :  { %2543 = vmatmul.mubr.msk.bf16.vlgmr.msra.gmra.mrb[24].mxu0 %vm590_vm1, %v2618_v7  ;;  %2548 = vmatmul.mubr.msk.bf16.vlgmr.msra.gmra.mrb[24].mxu1 %vm590_vm1, %v2618_v7 }
 0x137   :  { %658 = vmatprep.mubr.bf16.mxu0 %v2675_v10  ;;  %731 = vmatprep.mubr.bf16.mxu1 %v2675_v10 }
 0x13e   :  { %2544 = vmatmul.mubr.msk.bf16.gmra.mrb[28].mxu0 %vm590_vm1, %v2619_v8  ;;  %2549 = vmatmul.mubr.msk.bf16.gmra.mrb[28].mxu1 %vm590_vm1, %v2619_v8 }
 0x13f   :  { %668 = vmatprep.mubr.bf16.mxu0 %v2675_v10  ;;  %741 = vmatprep.mubr.bf16.mxu1 %v2675_v10 }
 0x146   :  { %2545 = vmatmul.mubr.msk.bf16.gmra.mrb[32].mxu0 %vm590_vm1, %v2620_v9  ;;  %2550 = vmatmul.mubr.msk.bf16.gmra.mrb[32].mxu1 %vm590_vm1, %v2620_v9 }
 0x147   :  { %678 = vmatprep.mubr.bf16.mxu0 %v2675_v10  ;;  %751 = vmatprep.mubr.bf16.mxu1 %v2675_v10 }
 0x14e   :  { %2546 = vmatmul.mubr.msk.bf16.gmra.mrb[36].mxu0 %vm590_vm1, %v2621_v11  ;;  %2551 = vmatmul.mubr.msk.bf16.gmra.mrb[36].mxu1 %vm590_vm1, %v2621_v11 }
 0x14f   :  { %887 = vmatprep.mubr.bf16.mxu0 %v2675_v10  ;;  %940 = vmatprep.mubr.bf16.mxu1 %v2675_v10 }
 0x209   :  { %v650_v14 = vpop.f32.mrb[24].mxu0  ;;  %v723_v15 = vpop.f32.mrb[24].mxu1 }
 0x20a   :  { %v651_v16 = vadd.f32 %v650_v14, %v533_v12  ;;  %v724_v17 = vadd.f32 %v723_v15, %v533_v12  ;;  %v652_v18 = vpop.f32.mrb[25].mxu0  ;;  %v725_v19 = vpop.f32.mrb[25].mxu1 }
 0x20b   :  { %v653_v20 = vadd.f32 %v652_v18, %v533_v12  ;;  %v726_v21 = vadd.f32 %v725_v19, %v533_v12  ;;  %v654_v22 = vpop.f32.mrb[26].mxu0  ;;  %v727_v23 = vpop.f32.mrb[26].mxu1 }
 0x20c   :  { %v655_v24 = vadd.f32 %v654_v22, %v538_v13  ;;  %v728_v25 = vadd.f32 %v727_v23, %v538_v13  ;;  %v656_v26 = vpop.f32.mrb[27].mxu0  ;;  %v729_v27 = vpop.f32.mrb[27].mxu1  ;;  %v762_v30 = vmax.f32 %v651_v16, 0.0  ;;  %v764_v31 = vmax.f32 %v724_v17, 0.0 }
 0x20d   :  { %v657_v28 = vadd.f32 %v656_v26, %v538_v13  ;;  %v730_v29 = vadd.f32 %v729_v27, %v538_v13  ;;  %v763_v34 = vmax.f32 %v653_v20, 0.0  ;;  %v765_v35 = vmax.f32 %v726_v21, 0.0 }
 0x20e   :  { %v766_v32 = vmax.f32 %v655_v24, 0.0  ;;  %v768_v33 = vmax.f32 %v728_v25, 0.0 }
 0x20f   :  { %v767_v36 = vmax.f32 %v657_v28, 0.0  ;;  %v769_v37 = vmax.f32 %v730_v29, 0.0 }
 0x210   :  { %v794_v40 = vpack.c.bf16 %v766_v32, %v762_v30  ;;  %v796_v41 = vpack.c.bf16 %v768_v33, %v764_v31 }
 0x211   :  { %v795_v42 = vpack.c.bf16 %v767_v36, %v763_v34  ;;  %v797_v43 = vpack.c.bf16 %v769_v37, %v765_v35  ;;  %v660_v44 = vpop.f32.mrb[28].mxu0  ;;  %v733_v45 = vpop.f32.mrb[28].mxu1 }
 0x212   :  { %v661_v46 = vadd.f32 %v660_v44, %v543_v38  ;;  %v734_v47 = vadd.f32 %v733_v45, %v543_v38  ;;  %v662_v48 = vpop.f32.mrb[29].mxu0  ;;  %v735_v49 = vpop.f32.mrb[29].mxu1 }
 0x213   :  { %v663_v50 = vadd.f32 %v662_v48, %v543_v38  ;;  %v736_v51 = vadd.f32 %v735_v49, %v543_v38  ;;  %v664_v52 = vpop.f32.mrb[30].mxu0  ;;  %v737_v53 = vpop.f32.mrb[30].mxu1  ;;  %855 = vmatprep.subr.bf16.mxu0 %v795_v42  ;;  %908 = vmatprep.subr.bf16.mxu1 %v797_v43 }
 0x214   :  { %v665_v54 = vadd.f32 %v664_v52, %v548_v39  ;;  %v738_v55 = vadd.f32 %v737_v53, %v548_v39  ;;  %v666_v56 = vpop.f32.mrb[31].mxu0  ;;  %v739_v57 = vpop.f32.mrb[31].mxu1  ;;  %856 = vmatpush1.bf16.msra.mxu0 %v794_v40  ;;  %909 = vmatpush1.bf16.msra.mxu1 %v796_v41  ;;  %v770_v60 = vmax.f32 %v661_v46, 0.0  ;;  %v772_v61 = vmax.f32 %v734_v47, 0.0 }
 0x215   :  { %v667_v58 = vadd.f32 %v666_v56, %v548_v39  ;;  %v740_v59 = vadd.f32 %v739_v57, %v548_v39  ;;  %v771_v0 = vmax.f32 %v663_v50, 0.0  ;;  %v773_v1 = vmax.f32 %v736_v51, 0.0  ;;  %v563_v35 = vpop.permute.xlu0 %562  ;;  %v568_v36 = vpop.permute.xlu1 %567 }
 0x216   :  { %v774_v62 = vmax.f32 %v665_v54, 0.0  ;;  %v776_v63 = vmax.f32 %v738_v55, 0.0 }
 0x217   :  { %v775_v2 = vmax.f32 %v667_v58, 0.0  ;;  %v777_v3 = vmax.f32 %v740_v59, 0.0 }
 0x218   :  { %v798_v6 = vpack.c.bf16 %v774_v62, %v770_v60  ;;  %v800_v7 = vpack.c.bf16 %v776_v63, %v772_v61 }
 0x219   :  { %v799_v8 = vpack.c.bf16 %v775_v2, %v771_v0  ;;  %v801_v9 = vpack.c.bf16 %v777_v3, %v773_v1  ;;  %v670_v11 = vpop.f32.mrb[32].mxu0  ;;  %v743_v12 = vpop.f32.mrb[32].mxu1 }
 0x21a   :  { %v671_v13 = vadd.f32 %v670_v11, %v553_v4  ;;  %v744_v14 = vadd.f32 %v743_v12, %v553_v4  ;;  %v672_v15 = vpop.f32.mrb[33].mxu0  ;;  %v745_v16 = vpop.f32.mrb[33].mxu1 }
 0x21b   :  { %v673_v17 = vadd.f32 %v672_v15, %v553_v4  ;;  %v746_v18 = vadd.f32 %v745_v16, %v553_v4  ;;  %v674_v19 = vpop.f32.mrb[34].mxu0  ;;  %v747_v20 = vpop.f32.mrb[34].mxu1  ;;  %857 = vmatprep.subr.bf16.mxu0 %v799_v8  ;;  %910 = vmatprep.subr.bf16.mxu1 %v801_v9 }
 0x21c   :  { %v675_v21 = vadd.f32 %v674_v19, %v558_v5  ;;  %v748_v22 = vadd.f32 %v747_v20, %v558_v5  ;;  %v676_v23 = vpop.f32.mrb[35].mxu0  ;;  %v749_v24 = vpop.f32.mrb[35].mxu1  ;;  %858 = vmatpush1.bf16.msra.mxu0 %v798_v6  ;;  %911 = vmatpush1.bf16.msra.mxu1 %v800_v7  ;;  %v778_v27 = vmax.f32 %v671_v13, 0.0  ;;  %v780_v28 = vmax.f32 %v744_v14, 0.0  ;;  %v2623_v6 = vld [vmem:[%s3579_s5 + $0x8] sm:$0xff]  }
 0x21d   :  { %v677_v25 = vadd.f32 %v676_v23, %v558_v5  ;;  %v750_v26 = vadd.f32 %v749_v24, %v558_v5  ;;  %v779_v31 = vmax.f32 %v673_v17, 0.0  ;;  %v781_v32 = vmax.f32 %v746_v18, 0.0  ;;  %v2622_v5 = vld [vmem:[%s3579_s5] sm:$0xff]   ;;  %v821_v7 = vpop.permute.xlu0 %820  ;;  %v826_v8 = vpop.permute.xlu1 %825 }
 0x21e   :  { %v782_v29 = vmax.f32 %v675_v21, 0.0  ;;  %v784_v30 = vmax.f32 %v748_v22, 0.0 }
 0x21f   :  { %v783_v33 = vmax.f32 %v677_v25, 0.0  ;;  %v785_v34 = vmax.f32 %v750_v26, 0.0 }
 0x220   :  { %v802_v37 = vpack.c.bf16 %v782_v29, %v778_v27  ;;  %v804_v38 = vpack.c.bf16 %v784_v30, %v780_v28 }
 0x221   :  { %v803_v39 = vpack.c.bf16 %v783_v33, %v779_v31  ;;  %v805_v40 = vpack.c.bf16 %v785_v34, %v781_v32  ;;  %v680_v41 = vpop.f32.mrb[36].mxu0  ;;  %v753_v42 = vpop.f32.mrb[36].mxu1 }
 0x222   :  { %v681_v43 = vadd.f32 %v680_v41, %v563_v35  ;;  %v754_v44 = vadd.f32 %v753_v42, %v563_v35  ;;  %v682_v45 = vpop.f32.mrb[37].mxu0  ;;  %v755_v46 = vpop.f32.mrb[37].mxu1 }
 0x223   :  { %v683_v47 = vadd.f32 %v682_v45, %v563_v35  ;;  %v756_v48 = vadd.f32 %v755_v46, %v563_v35  ;;  %v684_v49 = vpop.f32.mrb[38].mxu0  ;;  %v757_v50 = vpop.f32.mrb[38].mxu1  ;;  %859 = vmatprep.subr.bf16.mxu0 %v803_v39  ;;  %912 = vmatprep.subr.bf16.mxu1 %v805_v40 }
 0x224   :  { %v685_v51 = vadd.f32 %v684_v49, %v568_v36  ;;  %v758_v52 = vadd.f32 %v757_v50, %v568_v36  ;;  %v686_v53 = vpop.f32.mrb[39].mxu0  ;;  %v759_v54 = vpop.f32.mrb[39].mxu1  ;;  %860 = vmatpush1.bf16.msra.mxu0 %v802_v37  ;;  %913 = vmatpush1.bf16.msra.mxu1 %v804_v38  ;;  %v786_v57 = vmax.f32 %v681_v43, 0.0  ;;  %v788_v58 = vmax.f32 %v754_v44, 0.0 }
 0x225   :  { %v687_v55 = vadd.f32 %v686_v53, %v568_v36  ;;  %v760_v56 = vadd.f32 %v759_v54, %v568_v36  ;;  %v787_v61 = vmax.f32 %v683_v47, 0.0  ;;  %v789_v62 = vmax.f32 %v756_v48, 0.0  ;;  %v831_v34 = vpop.permute.xlu0 %830  ;;  %v836_v35 = vpop.permute.xlu1 %835 }
 0x226   :  { %v790_v59 = vmax.f32 %v685_v51, 0.0  ;;  %v792_v60 = vmax.f32 %v758_v52, 0.0 }
 0x227   :  { %v791_v63 = vmax.f32 %v687_v55, 0.0  ;;  %v793_v0 = vmax.f32 %v760_v56, 0.0 }
 0x228   :  { %v806_v1 = vpack.c.bf16 %v790_v59, %v786_v57  ;;  %v808_v2 = vpack.c.bf16 %v792_v60, %v788_v58 }
 0x229   :  { %v807_v3 = vpack.c.bf16 %v791_v63, %v787_v61  ;;  %v809_v4 = vpack.c.bf16 %v793_v0, %v789_v62 }
 0x22b   :  { %861 = vmatprep.subr.bf16.mxu0 %v807_v3  ;;  %914 = vmatprep.subr.bf16.mxu1 %v809_v4  ;;  %v2624_v4 = vld [vmem:[%s3581_s7] sm:$0xff]  }
 0x22c   :  { %862 = vmatpush1.bf16.msra.mxu0 %v806_v1  ;;  %915 = vmatpush1.bf16.msra.mxu1 %v808_v2 }
 0x22f   :  { %2554 = vmatmul.mubr.msk.bf16.vlgmr.msra.gmra.mrb[40].mxu0 %vm848_vm2, %v2622_v5  ;;  %2556 = vmatmul.mubr.msk.bf16.vlgmr.msra.gmra.mrb[40].mxu1 %vm848_vm2, %v2622_v5  ;;  %v992_v5 = vpop.permute.xlu0 %991 }
 0x230   :  { %897 = vmatprep.mubr.bf16.mxu0 %v2675_v10  ;;  %950 = vmatprep.mubr.bf16.mxu1 %v2675_v10 }
 0x237   :  { %2555 = vmatmul.mubr.msk.bf16.gmra.mrb[44].mxu0 %vm848_vm2, %v2623_v6  ;;  %2557 = vmatmul.mubr.msk.bf16.gmra.mrb[44].mxu1 %vm848_vm2, %v2623_v6  ;;  %v997_v6 = vpop.permute.xlu1 %996 }
 0x238   :  { %1040 = vmatprep.mubr.bf16.mxu0 %v2675_v10  ;;  %1083 = vmatprep.mubr.bf16.mxu1 %v2675_v10 }
 0x302   :  { %v889_v9 = vpop.f32.mrb[40].mxu0  ;;  %v942_v11 = vpop.f32.mrb[40].mxu1 }
 0x303   :  { %v890_v12 = vadd.f32 %v889_v9, %v821_v7  ;;  %v943_v13 = vadd.f32 %v942_v11, %v821_v7  ;;  %v891_v14 = vpop.f32.mrb[41].mxu0  ;;  %v944_v15 = vpop.f32.mrb[41].mxu1 }
 0x304   :  { %v892_v16 = vadd.f32 %v891_v14, %v821_v7  ;;  %v945_v17 = vadd.f32 %v944_v15, %v821_v7  ;;  %v893_v18 = vpop.f32.mrb[42].mxu0  ;;  %v946_v19 = vpop.f32.mrb[42].mxu1 }
 0x305   :  { %v894_v20 = vadd.f32 %v893_v18, %v826_v8  ;;  %v947_v21 = vadd.f32 %v946_v19, %v826_v8  ;;  %v895_v22 = vpop.f32.mrb[43].mxu0  ;;  %v948_v23 = vpop.f32.mrb[43].mxu1  ;;  %v961_v26 = vmax.f32 %v890_v12, 0.0  ;;  %v963_v27 = vmax.f32 %v943_v13, 0.0 }
 0x306   :  { %v896_v24 = vadd.f32 %v895_v22, %v826_v8  ;;  %v949_v25 = vadd.f32 %v948_v23, %v826_v8  ;;  %v962_v30 = vmax.f32 %v892_v16, 0.0  ;;  %v964_v31 = vmax.f32 %v945_v17, 0.0 }
 0x307   :  { %v965_v28 = vmax.f32 %v894_v20, 0.0  ;;  %v967_v29 = vmax.f32 %v947_v21, 0.0 }
 0x308   :  { %v966_v32 = vmax.f32 %v896_v24, 0.0  ;;  %v968_v33 = vmax.f32 %v949_v25, 0.0 }
 0x309   :  { %v977_v36 = vpack.c.bf16 %v965_v28, %v961_v26  ;;  %v979_v37 = vpack.c.bf16 %v967_v29, %v963_v27  ;;  %v2625_v28 = vld [vmem:[%s3583_s9] sm:$0xff]   ;;  %v2626_v29 = vld [vmem:[%s3583_s9 + $0x8] sm:$0xff]  }
 0x30a   :  { %v978_v38 = vpack.c.bf16 %v966_v32, %v962_v30  ;;  %v980_v39 = vpack.c.bf16 %v968_v33, %v964_v31  ;;  %v899_v40 = vpop.f32.mrb[44].mxu0  ;;  %v952_v41 = vpop.f32.mrb[44].mxu1 }
 0x30b   :  { %v900_v42 = vadd.f32 %v899_v40, %v831_v34  ;;  %v953_v43 = vadd.f32 %v952_v41, %v831_v34  ;;  %v901_v44 = vpop.f32.mrb[45].mxu0  ;;  %v954_v45 = vpop.f32.mrb[45].mxu1 }
 0x30c   :  { %v902_v46 = vadd.f32 %v901_v44, %v831_v34  ;;  %v955_v47 = vadd.f32 %v954_v45, %v831_v34  ;;  %v903_v48 = vpop.f32.mrb[46].mxu0  ;;  %v956_v49 = vpop.f32.mrb[46].mxu1  ;;  %1008 = vmatprep.subr.bf16.mxu0 %v978_v38  ;;  %1051 = vmatprep.subr.bf16.mxu1 %v980_v39 }
 0x30d   :  { %v904_v50 = vadd.f32 %v903_v48, %v836_v35  ;;  %v957_v51 = vadd.f32 %v956_v49, %v836_v35  ;;  %v905_v52 = vpop.f32.mrb[47].mxu0  ;;  %v958_v53 = vpop.f32.mrb[47].mxu1  ;;  %1009 = vmatpush1.bf16.msra.mxu0 %v977_v36  ;;  %1052 = vmatpush1.bf16.msra.mxu1 %v979_v37  ;;  %v969_v56 = vmax.f32 %v900_v42, 0.0  ;;  %v971_v57 = vmax.f32 %v953_v43, 0.0 }
 0x30e   :  { %v906_v54 = vadd.f32 %v905_v52, %v836_v35  ;;  %v959_v55 = vadd.f32 %v958_v53, %v836_v35  ;;  %v970_v60 = vmax.f32 %v902_v46, 0.0  ;;  %v972_v61 = vmax.f32 %v955_v47, 0.0  ;;  %v1117_v30 = vpop.permute.xlu0 %1116  ;;  %v1122_v31 = vpop.permute.xlu1 %1121 }
 0x30f   :  { %v973_v58 = vmax.f32 %v904_v50, 0.0  ;;  %v975_v59 = vmax.f32 %v957_v51, 0.0 }
 0x310   :  { %v974_v62 = vmax.f32 %v906_v54, 0.0  ;;  %v976_v63 = vmax.f32 %v959_v55, 0.0 }
 0x311   :  { %v981_v0 = vpack.c.bf16 %v973_v58, %v969_v56  ;;  %v983_v1 = vpack.c.bf16 %v975_v59, %v971_v57 }
 0x312   :  { %v982_v2 = vpack.c.bf16 %v974_v62, %v970_v60  ;;  %v984_v3 = vpack.c.bf16 %v976_v63, %v972_v61  ;;  %v1127_v56 = vpop.permute.xlu0 %1126  ;;  %v1132_v57 = vpop.permute.xlu1 %1131 }
 0x314   :  { %1010 = vmatprep.subr.bf16.mxu0 %v982_v2  ;;  %1053 = vmatprep.subr.bf16.mxu1 %v984_v3 }
 0x315   :  { %1011 = vmatpush1.bf16.msra.mxu0 %v981_v0  ;;  %1054 = vmatpush1.bf16.msra.mxu1 %v983_v1 }
 0x318   :  { %2559 = vmatmul.mubr.msk.bf16.vlgmr.msra.gmra.mrb[48].mxu0 %vm1004_vm3, %v2624_v4  ;;  %2560 = vmatmul.mubr.msk.bf16.vlgmr.msra.gmra.mrb[48].mxu1 %vm1004_vm3, %v2624_v4 }
 0x319   :  { %1183 = vmatprep.mubr.bf16.mxu0 %v2675_v10  ;;  %1236 = vmatprep.mubr.bf16.mxu1 %v2675_v10 }
 0x3eb   :  { %v1042_v7 = vpop.f32.mrb[48].mxu0  ;;  %v1085_v8 = vpop.f32.mrb[48].mxu1 }
 0x3ec   :  { %v1043_v9 = vadd.f32 %v1042_v7, %v992_v5  ;;  %v1086_v11 = vadd.f32 %v1085_v8, %v992_v5  ;;  %v1044_v12 = vpop.f32.mrb[49].mxu0  ;;  %v1087_v13 = vpop.f32.mrb[49].mxu1 }
 0x3ed   :  { %v1045_v14 = vadd.f32 %v1044_v12, %v992_v5  ;;  %v1088_v15 = vadd.f32 %v1087_v13, %v992_v5  ;;  %v1046_v16 = vpop.f32.mrb[50].mxu0  ;;  %v1089_v17 = vpop.f32.mrb[50].mxu1 }
 0x3ee   :  { %1094 = vst [vmem:[#allocation2] sm:$0xff] %v1043_v9  ;;  %1096 = vst [vmem:[#allocation2 + $0x10] sm:$0xff] %v1086_v11  ;;  %v1047_v18 = vadd.f32 %v1046_v16, %v997_v6  ;;  %v1090_v19 = vadd.f32 %v1089_v17, %v997_v6  ;;  %v1048_v20 = vpop.f32.mrb[51].mxu0  ;;  %v1091_v21 = vpop.f32.mrb[51].mxu1 }
 0x3ef   :  { %1095 = vst [vmem:[#allocation2 + $0x8] sm:$0xff] %v1045_v14  ;;  %1097 = vst [vmem:[#allocation2 + $0x18] sm:$0xff] %v1088_v15  ;;  %v1049_v22 = vadd.f32 %v1048_v20, %v997_v6  ;;  %v1092_v23 = vadd.f32 %v1091_v21, %v997_v6 }
 0x3f0   :  { %1098 = vst [vmem:[#allocation2 + $0x20] sm:$0xff] %v1047_v18  ;;  %v1102_v24 = vpack.c.bf16 %v1047_v18, %v1043_v9  ;;  %1100 = vst [vmem:[#allocation2 + $0x30] sm:$0xff] %v1090_v19  ;;  %v1104_v25 = vpack.c.bf16 %v1090_v19, %v1086_v11 }
 0x3f1   :  { %1099 = vst [vmem:[#allocation2 + $0x28] sm:$0xff] %v1049_v22  ;;  %v1103_v26 = vpack.c.bf16 %v1049_v22, %v1045_v14  ;;  %1101 = vst [vmem:[#allocation2 + $0x38] sm:$0xff] %v1092_v23  ;;  %v1105_v27 = vpack.c.bf16 %v1092_v23, %v1088_v15 }
 0x3f3   :  { %1151 = vmatprep.subr.bf16.mxu0 %v1103_v26  ;;  %1204 = vmatprep.subr.bf16.mxu1 %v1105_v27  ;;  %v2627_v27 = vld [vmem:[%s3585_s11] sm:$0xff]  }
 0x3f4   :  { %1152 = vmatpush1.bf16.msra.mxu0 %v1102_v24  ;;  %1205 = vmatpush1.bf16.msra.mxu1 %v1104_v25 }
 0x3f7   :  { %2563 = vmatmul.mubr.msk.bf16.vlgmr.msra.gmra.mrb[52].mxu0 %vm1144_vm4, %v2625_v28  ;;  %2565 = vmatmul.mubr.msk.bf16.vlgmr.msra.gmra.mrb[52].mxu1 %vm1144_vm4, %v2625_v28  ;;  %v2628_v28 = vld [vmem:[%s3585_s11 + $0x8] sm:$0xff]  }
 0x3f8   :  { %1193 = vmatprep.mubr.bf16.mxu0 %v2675_v10  ;;  %1246 = vmatprep.mubr.bf16.mxu1 %v2675_v10 }
 0x3ff   :  { %2564 = vmatmul.mubr.msk.bf16.gmra.mrb[56].mxu0 %vm1144_vm4, %v2626_v29  ;;  %2566 = vmatmul.mubr.msk.bf16.gmra.mrb[56].mxu1 %vm1144_vm4, %v2626_v29  ;;  %v2629_v29 = vld [vmem:[%s3585_s11 + $0x10] sm:$0xff]  }
 0x400   :  { %1401 = vmatprep.mubr.bf16.mxu0 %v2675_v10  ;;  %1474 = vmatprep.mubr.bf16.mxu1 %v2675_v10 }
 0x4ca   :  { %v1185_v32 = vpop.f32.mrb[52].mxu0  ;;  %v1238_v33 = vpop.f32.mrb[52].mxu1 }
 0x4cb   :  { %v1186_v34 = vadd.f32 %v1185_v32, %v1117_v30  ;;  %v1239_v35 = vadd.f32 %v1238_v33, %v1117_v30  ;;  %v1187_v36 = vpop.f32.mrb[53].mxu0  ;;  %v1240_v37 = vpop.f32.mrb[53].mxu1 }
 0x4cc   :  { %v1188_v38 = vadd.f32 %v1187_v36, %v1117_v30  ;;  %v1241_v39 = vadd.f32 %v1240_v37, %v1117_v30  ;;  %v1189_v40 = vpop.f32.mrb[54].mxu0  ;;  %v1242_v41 = vpop.f32.mrb[54].mxu1  ;;  %v2630_v30 = vld [vmem:[%s3585_s11 + $0x18] sm:$0xff]  }
 0x4cd   :  { %v1190_v42 = vadd.f32 %v1189_v40, %v1122_v31  ;;  %v1243_v43 = vadd.f32 %v1242_v41, %v1122_v31  ;;  %v1191_v44 = vpop.f32.mrb[55].mxu0  ;;  %v1244_v45 = vpop.f32.mrb[55].mxu1  ;;  %v1257_v48 = vmax.f32 %v1186_v34, 0.0  ;;  %v1259_v49 = vmax.f32 %v1239_v35, 0.0 }
 0x4ce   :  { %v1192_v46 = vadd.f32 %v1191_v44, %v1122_v31  ;;  %v1245_v47 = vadd.f32 %v1244_v45, %v1122_v31  ;;  %v1258_v52 = vmax.f32 %v1188_v38, 0.0  ;;  %v1260_v53 = vmax.f32 %v1241_v39, 0.0  ;;  %v1300_v31 = vpop.permute.xlu0 %1299  ;;  %v1305_v32 = vpop.permute.xlu1 %1304 }
 0x4cf   :  { %v1261_v50 = vmax.f32 %v1190_v42, 0.0  ;;  %v1263_v51 = vmax.f32 %v1243_v43, 0.0 }
 0x4d0   :  { %v1262_v54 = vmax.f32 %v1192_v46, 0.0  ;;  %v1264_v55 = vmax.f32 %v1245_v47, 0.0 }
 0x4d1   :  { %v1273_v58 = vpack.c.bf16 %v1261_v50, %v1257_v48  ;;  %v1275_v59 = vpack.c.bf16 %v1263_v51, %v1259_v49 }
 0x4d2   :  { %v1274_v60 = vpack.c.bf16 %v1262_v54, %v1258_v52  ;;  %v1276_v61 = vpack.c.bf16 %v1264_v55, %v1260_v53  ;;  %v1195_v62 = vpop.f32.mrb[56].mxu0  ;;  %v1248_v63 = vpop.f32.mrb[56].mxu1 }
 0x4d3   :  { %v1196_v0 = vadd.f32 %v1195_v62, %v1127_v56  ;;  %v1249_v1 = vadd.f32 %v1248_v63, %v1127_v56  ;;  %v1197_v2 = vpop.f32.mrb[57].mxu0  ;;  %v1250_v3 = vpop.f32.mrb[57].mxu1 }
 0x4d4   :  { %v1198_v4 = vadd.f32 %v1197_v2, %v1127_v56  ;;  %v1251_v5 = vadd.f32 %v1250_v3, %v1127_v56  ;;  %v1199_v6 = vpop.f32.mrb[58].mxu0  ;;  %v1252_v7 = vpop.f32.mrb[58].mxu1  ;;  %1369 = vmatprep.subr.bf16.mxu0 %v1274_v60  ;;  %1442 = vmatprep.subr.bf16.mxu1 %v1276_v61 }
 0x4d5   :  { %v1200_v8 = vadd.f32 %v1199_v6, %v1132_v57  ;;  %v1253_v9 = vadd.f32 %v1252_v7, %v1132_v57  ;;  %v1201_v11 = vpop.f32.mrb[59].mxu0  ;;  %v1254_v12 = vpop.f32.mrb[59].mxu1  ;;  %1370 = vmatpush1.bf16.msra.mxu0 %v1273_v58  ;;  %1443 = vmatpush1.bf16.msra.mxu1 %v1275_v59  ;;  %v1265_v15 = vmax.f32 %v1196_v0, 0.0  ;;  %v1267_v16 = vmax.f32 %v1249_v1, 0.0 }
 0x4d6   :  { %v1202_v13 = vadd.f32 %v1201_v11, %v1132_v57  ;;  %v1255_v14 = vadd.f32 %v1254_v12, %v1132_v57  ;;  %v1266_v19 = vmax.f32 %v1198_v4, 0.0  ;;  %v1268_v20 = vmax.f32 %v1251_v5, 0.0  ;;  %v1310_v57 = vpop.permute.xlu0 %1309  ;;  %v1315_v58 = vpop.permute.xlu1 %1314 }
 0x4d7   :  { %v1269_v17 = vmax.f32 %v1200_v8, 0.0  ;;  %v1271_v18 = vmax.f32 %v1253_v9, 0.0 }
 0x4d8   :  { %v1270_v21 = vmax.f32 %v1202_v13, 0.0  ;;  %v1272_v22 = vmax.f32 %v1255_v14, 0.0 }
 0x4d9   :  { %v1277_v23 = vpack.c.bf16 %v1269_v17, %v1265_v15  ;;  %v1279_v24 = vpack.c.bf16 %v1271_v18, %v1267_v16 }
 0x4da   :  { %v1278_v25 = vpack.c.bf16 %v1270_v21, %v1266_v19  ;;  %v1280_v26 = vpack.c.bf16 %v1272_v22, %v1268_v20 }
 0x4dc   :  { %1371 = vmatprep.subr.bf16.mxu0 %v1278_v25  ;;  %1444 = vmatprep.subr.bf16.mxu1 %v1280_v26  ;;  %v1325_v25 = vpop.permute.xlu1 %1324 }
 0x4dd   :  { %1372 = vmatpush1.bf16.msra.mxu0 %v1277_v23  ;;  %1445 = vmatpush1.bf16.msra.mxu1 %v1279_v24  ;;  %v1320_v24 = vpop.permute.xlu0 %1319 }
 0x4e0   :  { %2571 = vmatmul.mubr.msk.bf16.vlgmr.msra.gmra.mrb[60].mxu0 %vm1004_vm3, %v2627_v27  ;;  %2575 = vmatmul.mubr.msk.bf16.vlgmr.msra.gmra.mrb[60].mxu1 %vm1004_vm3, %v2627_v27 }
 0x4e1   :  { %1411 = vmatprep.mubr.bf16.mxu0 %v2675_v10  ;;  %1484 = vmatprep.mubr.bf16.mxu1 %v2675_v10 }
 0x4e8   :  { %2572 = vmatmul.mubr.msk.bf16.gmra.mrb[64].mxu0 %vm1004_vm3, %v2628_v28  ;;  %2576 = vmatmul.mubr.msk.bf16.gmra.mrb[64].mxu1 %vm1004_vm3, %v2628_v28 }
 0x4e9   :  { %1421 = vmatprep.mubr.bf16.mxu0 %v2675_v10  ;;  %1494 = vmatprep.mubr.bf16.mxu1 %v2675_v10 }
 0x4f0   :  { %2573 = vmatmul.mubr.msk.bf16.gmra.mrb[68].mxu0 %vm1004_vm3, %v2629_v29  ;;  %2577 = vmatmul.mubr.msk.bf16.gmra.mrb[68].mxu1 %vm1004_vm3, %v2629_v29 }
 0x4f1   :  { %1431 = vmatprep.mubr.bf16.mxu0 %v2675_v10  ;;  %1504 = vmatprep.mubr.bf16.mxu1 %v2675_v10 }
 0x4f8   :  { %2574 = vmatmul.mubr.msk.bf16.gmra.mrb[72].mxu0 %vm1004_vm3, %v2630_v30  ;;  %2578 = vmatmul.mubr.msk.bf16.gmra.mrb[72].mxu1 %vm1004_vm3, %v2630_v30 }
 0x4f9   :  { %1771 = vmatprep.mubr.bf16.mxu0 %v2675_v10  ;;  %1884 = vmatprep.mubr.bf16.mxu1 %v2675_v10 }
 0x5b3   :  { %v1403_v33 = vpop.f32.mrb[60].mxu0  ;;  %v1476_v34 = vpop.f32.mrb[60].mxu1 }
 0x5b4   :  { %v1404_v35 = vadd.f32 %v1403_v33, %v1300_v31  ;;  %v1477_v36 = vadd.f32 %v1476_v34, %v1300_v31  ;;  %v1405_v37 = vpop.f32.mrb[61].mxu0  ;;  %v1478_v38 = vpop.f32.mrb[61].mxu1 }
 0x5b5   :  { %v1406_v39 = vadd.f32 %v1405_v37, %v1300_v31  ;;  %v1479_v40 = vadd.f32 %v1478_v38, %v1300_v31  ;;  %v1407_v41 = vpop.f32.mrb[62].mxu0  ;;  %v1480_v42 = vpop.f32.mrb[62].mxu1 }
 0x5b6   :  { %v1408_v43 = vadd.f32 %v1407_v41, %v1305_v32  ;;  %v1481_v44 = vadd.f32 %v1480_v42, %v1305_v32  ;;  %v1409_v45 = vpop.f32.mrb[63].mxu0  ;;  %v1482_v46 = vpop.f32.mrb[63].mxu1  ;;  %v1515_v49 = vmax.f32 %v1404_v35, 0.0  ;;  %v1517_v50 = vmax.f32 %v1477_v36, 0.0 }
 0x5b7   :  { %v1410_v47 = vadd.f32 %v1409_v45, %v1305_v32  ;;  %v1483_v48 = vadd.f32 %v1482_v46, %v1305_v32  ;;  %v1516_v53 = vmax.f32 %v1406_v39, 0.0  ;;  %v1518_v54 = vmax.f32 %v1479_v40, 0.0 }
 0x5b8   :  { %v1519_v51 = vmax.f32 %v1408_v43, 0.0  ;;  %v1521_v52 = vmax.f32 %v1481_v44, 0.0 }
 0x5b9   :  { %v1520_v55 = vmax.f32 %v1410_v47, 0.0  ;;  %v1522_v56 = vmax.f32 %v1483_v48, 0.0 }
 0x5ba   :  { %v1547_v59 = vpack.c.bf16 %v1519_v51, %v1515_v49  ;;  %v1549_v60 = vpack.c.bf16 %v1521_v52, %v1517_v50 }
 0x5bb   :  { %v1548_v61 = vpack.c.bf16 %v1520_v55, %v1516_v53  ;;  %v1550_v62 = vpack.c.bf16 %v1522_v56, %v1518_v54  ;;  %v1413_v63 = vpop.f32.mrb[64].mxu0  ;;  %v1486_v0 = vpop.f32.mrb[64].mxu1 }
 0x5bc   :  { %v1414_v1 = vadd.f32 %v1413_v63, %v1310_v57  ;;  %v1487_v2 = vadd.f32 %v1486_v0, %v1310_v57  ;;  %v1415_v3 = vpop.f32.mrb[65].mxu0  ;;  %v1488_v4 = vpop.f32.mrb[65].mxu1 }
 0x5bd   :  { %v1416_v5 = vadd.f32 %v1415_v3, %v1310_v57  ;;  %v1489_v6 = vadd.f32 %v1488_v4, %v1310_v57  ;;  %v1417_v7 = vpop.f32.mrb[66].mxu0  ;;  %v1490_v8 = vpop.f32.mrb[66].mxu1  ;;  %1739 = vmatprep.subr.bf16.mxu0 %v1548_v61  ;;  %1852 = vmatprep.subr.bf16.mxu1 %v1550_v62 }
 0x5be   :  { %v1418_v9 = vadd.f32 %v1417_v7, %v1315_v58  ;;  %v1491_v11 = vadd.f32 %v1490_v8, %v1315_v58  ;;  %v1419_v12 = vpop.f32.mrb[67].mxu0  ;;  %v1492_v13 = vpop.f32.mrb[67].mxu1  ;;  %1740 = vmatpush1.bf16.msra.mxu0 %v1547_v59  ;;  %1853 = vmatpush1.bf16.msra.mxu1 %v1549_v60  ;;  %v1523_v16 = vmax.f32 %v1414_v1, 0.0  ;;  %v1525_v17 = vmax.f32 %v1487_v2, 0.0 }
 0x5bf   :  { %v1420_v14 = vadd.f32 %v1419_v12, %v1315_v58  ;;  %v1493_v15 = vadd.f32 %v1492_v13, %v1315_v58  ;;  %v1524_v20 = vmax.f32 %v1416_v5, 0.0  ;;  %v1526_v21 = vmax.f32 %v1489_v6, 0.0  ;;  %v1330_v54 = vpop.permute.xlu0 %1329  ;;  %v1335_v55 = vpop.permute.xlu1 %1334 }
 0x5c0   :  { %v1527_v18 = vmax.f32 %v1418_v9, 0.0  ;;  %v1529_v19 = vmax.f32 %v1491_v11, 0.0 }
 0x5c1   :  { %v1528_v22 = vmax.f32 %v1420_v14, 0.0  ;;  %v1530_v23 = vmax.f32 %v1493_v15, 0.0 }
 0x5c2   :  { %v1551_v26 = vpack.c.bf16 %v1527_v18, %v1523_v16  ;;  %v1553_v27 = vpack.c.bf16 %v1529_v19, %v1525_v17 }
 0x5c3   :  { %v1552_v28 = vpack.c.bf16 %v1528_v22, %v1524_v20  ;;  %v1554_v29 = vpack.c.bf16 %v1530_v23, %v1526_v21  ;;  %v1423_v30 = vpop.f32.mrb[68].mxu0  ;;  %v1496_v31 = vpop.f32.mrb[68].mxu1 }
 0x5c4   :  { %v1424_v32 = vadd.f32 %v1423_v30, %v1320_v24  ;;  %v1497_v33 = vadd.f32 %v1496_v31, %v1320_v24  ;;  %v1425_v34 = vpop.f32.mrb[69].mxu0  ;;  %v1498_v35 = vpop.f32.mrb[69].mxu1  ;;  %v2636_v30 = vld [vmem:[%s3587_s13 + $0x28] sm:$0xff]   ;;  %v2637_v31 = vld [vmem:[%s3587_s13 + $0x30] sm:$0xff]  }
 0x5c5   :  { %v1426_v36 = vadd.f32 %v1425_v34, %v1320_v24  ;;  %v1499_v37 = vadd.f32 %v1498_v35, %v1320_v24  ;;  %v1427_v38 = vpop.f32.mrb[70].mxu0  ;;  %v1500_v39 = vpop.f32.mrb[70].mxu1  ;;  %1741 = vmatprep.subr.bf16.mxu0 %v1552_v28  ;;  %1854 = vmatprep.subr.bf16.mxu1 %v1554_v29  ;;  %v2634_v28 = vld [vmem:[%s3587_s13 + $0x18] sm:$0xff]   ;;  %v2635_v29 = vld [vmem:[%s3587_s13 + $0x20] sm:$0xff]   ;;  %v2031_v34 = vld [vmem:[%s3593_s23 + $0x10] sm:$0xff] }
 0x5c6   :  { %v1428_v40 = vadd.f32 %v1427_v38, %v1325_v25  ;;  %v1501_v41 = vadd.f32 %v1500_v39, %v1325_v25  ;;  %v1429_v42 = vpop.f32.mrb[71].mxu0  ;;  %v1502_v43 = vpop.f32.mrb[71].mxu1  ;;  %1742 = vmatpush1.bf16.msra.mxu0 %v1551_v26  ;;  %1855 = vmatpush1.bf16.msra.mxu1 %v1553_v27  ;;  %v1531_v46 = vmax.f32 %v1424_v32, 0.0  ;;  %v1533_v47 = vmax.f32 %v1497_v33, 0.0  ;;  %v2632_v26 = vld [vmem:[%s3587_s13 + $0x8] sm:$0xff]   ;;  %v2633_v27 = vld [vmem:[%s3587_s13 + $0x10] sm:$0xff]  }
 0x5c7   :  { %v1430_v44 = vadd.f32 %v1429_v42, %v1325_v25  ;;  %v1503_v45 = vadd.f32 %v1502_v43, %v1325_v25  ;;  %v1532_v50 = vmax.f32 %v1426_v36, 0.0  ;;  %v1534_v51 = vmax.f32 %v1499_v37, 0.0  ;;  %v2631_v25 = vld [vmem:[%s3587_s13] sm:$0xff]   ;;  %v2638_v32 = vld [vmem:[%s3587_s13 + $0x38] sm:$0xff]  }
 0x5c8   :  { %v1535_v48 = vmax.f32 %v1428_v40, 0.0  ;;  %v1537_v49 = vmax.f32 %v1501_v41, 0.0  ;;  %v2029_v33 = vld [vmem:[%s3593_s23] sm:$0xff]  ;;  %v2032_v35 = vld [vmem:[%s3593_s23 + $0x18] sm:$0xff]  ;;  %v2047_v37 = vunpack.c.0.s8 %v2031_v34  ;;  %v2051_v43 = vunpack.c.1.s8 %v2031_v34 }
 0x5c9   :  { %v1536_v52 = vmax.f32 %v1430_v44, 0.0  ;;  %v1538_v53 = vmax.f32 %v1503_v45, 0.0  ;;  %v2045_v36 = vunpack.c.0.s8 %v2029_v33  ;;  %v2048_v39 = vunpack.c.0.s8 %v2032_v35 }
 0x5ca   :  { %v1555_v56 = vpack.c.bf16 %v1535_v48, %v1531_v46  ;;  %v1557_v57 = vpack.c.bf16 %v1537_v49, %v1533_v47  ;;  %v2111_v41 = vand.u32 255, %v2047_v37  ;;  %v2049_v42 = vunpack.c.1.s8 %v2029_v33 }
 0x5cb   :  { %v1556_v58 = vpack.c.bf16 %v1536_v52, %v1532_v50  ;;  %v1558_v59 = vpack.c.bf16 %v1538_v53, %v1534_v51  ;;  %v1433_v60 = vpop.f32.mrb[72].mxu0  ;;  %v1506_v61 = vpop.f32.mrb[72].mxu1  ;;  %v2109_v40 = vand.u32 255, %v2045_v36  ;;  %v2112_v45 = vand.u32 255, %v2048_v39 }
 0x5cc   :  { %v1434_v62 = vadd.f32 %v1433_v60, %v1330_v54  ;;  %v1507_v63 = vadd.f32 %v1506_v61, %v1330_v54  ;;  %v1435_v0 = vpop.f32.mrb[73].mxu0  ;;  %v1508_v1 = vpop.f32.mrb[73].mxu1  ;;  %v2175_v48 = vcvt.s32.f32 %v2111_v41  ;;  %v2052_v49 = vunpack.c.1.s8 %v2032_v35 }
 0x5cd   :  { %v1436_v2 = vadd.f32 %v1435_v0, %v1330_v54  ;;  %v1509_v3 = vadd.f32 %v1508_v1, %v1330_v54  ;;  %v1437_v4 = vpop.f32.mrb[74].mxu0  ;;  %v1510_v5 = vpop.f32.mrb[74].mxu1  ;;  %1743 = vmatprep.subr.bf16.mxu0 %v1556_v58  ;;  %1856 = vmatprep.subr.bf16.mxu1 %v1558_v59  ;;  %v2173_v47 = vcvt.s32.f32 %v2109_v40  ;;  %v2113_v50 = vand.u32 255, %v2049_v42 }
 0x5ce   :  { %v1438_v6 = vadd.f32 %v1437_v4, %v1335_v55  ;;  %v1511_v7 = vadd.f32 %v1510_v5, %v1335_v55  ;;  %v1439_v8 = vpop.f32.mrb[75].mxu0  ;;  %v1512_v9 = vpop.f32.mrb[75].mxu1  ;;  %1744 = vmatpush1.bf16.msra.mxu0 %v1555_v56  ;;  %1857 = vmatpush1.bf16.msra.mxu1 %v1557_v57  ;;  %v1539_v13 = vmax.f32 %v1434_v62, 0.0  ;;  %v1541_v14 = vmax.f32 %v1507_v63, 0.0 }
 0x5cf   :  { %v1440_v11 = vadd.f32 %v1439_v8, %v1335_v55  ;;  %v1513_v12 = vadd.f32 %v1512_v9, %v1335_v55  ;;  %v1540_v17 = vmax.f32 %v1436_v2, 0.0  ;;  %v1542_v18 = vmax.f32 %v1509_v3, 0.0 }
 0x5d0   :  { %v1543_v15 = vmax.f32 %v1438_v6, 0.0  ;;  %v1545_v16 = vmax.f32 %v1511_v7, 0.0  ;;  %v2115_v51 = vand.u32 255, %v2051_v43  ;;  %v2053_v52 = vunpack.c.2.s8 %v2029_v33  ;;  %v3173_v6 = vld [vmem:[%s3593_s23 + $0x20] sm:$0xff]  ;;  %v3178_v7 = vld [vmem:[%s3593_s23 + $0x30] sm:$0xff] }
 0x5d1   :  { %v1544_v19 = vmax.f32 %v1440_v11, 0.0  ;;  %v1546_v20 = vmax.f32 %v1513_v12, 0.0  ;;  %v2055_v53 = vunpack.c.2.s8 %v2031_v34  ;;  %v2176_v55 = vcvt.s32.f32 %v2112_v45 }
 0x5d2   :  { %v1559_v21 = vpack.c.bf16 %v1543_v15, %v1539_v13  ;;  %v1561_v22 = vpack.c.bf16 %v1545_v16, %v1541_v14  ;;  %v2056_v57 = vunpack.c.2.s8 %v2032_v35  ;;  %v2057_v59 = vunpack.c.3.s8 %v2029_v33 }
 0x5d3   :  { %v1560_v23 = vpack.c.bf16 %v1544_v19, %v1540_v17  ;;  %v1562_v24 = vpack.c.bf16 %v1546_v20, %v1542_v18  ;;  %v2059_v60 = vunpack.c.3.s8 %v2031_v34  ;;  %v3166_v62 = vmul.f32 0.003921569, %v2173_v47  ;;  %v3187_v17 = vld [vmem:[%s3593_s23 + $0x28] sm:$0xff]  ;;  %v3192_v18 = vld [vmem:[%s3593_s23 + $0x38] sm:$0xff]  ;;  %v1603_v47 = vpop.permute.xlu1 %1602 }
 0x5d4   :  { %v3168_v63 = vmul.f32 0.003921569, %v2175_v48  ;;  %v2116_v0 = vand.u32 255, %v2052_v49  ;;  %v2060_v1 = vunpack.c.3.s8 %v2032_v35  ;;  %v2177_v2 = vcvt.s32.f32 %v2113_v50 }
 0x5d5   :  { %1745 = vmatprep.subr.bf16.mxu0 %v1560_v23  ;;  %1858 = vmatprep.subr.bf16.mxu1 %v1562_v24  ;;  %v2179_v3 = vcvt.s32.f32 %v2115_v51  ;;  %v2117_v4 = vand.u32 255, %v2053_v52  ;;  %v2119_v5 = vand.u32 255, %v2055_v53  ;;  %v3182_v9 = vmul.f32 0.003921569, %v2176_v55 }
 0x5d6   :  { %1746 = vmatpush1.bf16.msra.mxu0 %v1559_v21  ;;  %1859 = vmatpush1.bf16.msra.mxu1 %v1561_v22  ;;  %v2120_v12 = vand.u32 255, %v2056_v57  ;;  %v2121_v14 = vand.u32 255, %v2057_v59  ;;  %v2123_v15 = vand.u32 255, %v2059_v60  ;;  %v2180_v19 = vcvt.s32.f32 %v2116_v0 }
 0x5d7   :  { %v2124_v20 = vand.u32 255, %v2060_v1  ;;  %v2061_v21 = vunpack.c.0.s8 %v3173_v6  ;;  %v2063_v22 = vunpack.c.0.s8 %v3178_v7  ;;  %v3196_v23 = vmul.f32 0.003921569, %v2177_v2 }
 0x5d8   :  { %v3198_v24 = vmul.f32 0.003921569, %v2179_v3  ;;  %v2187_v33 = vcvt.s32.f32 %v2123_v15  ;;  %v2065_v40 = vunpack.c.1.s8 %v3173_v6  ;;  %v2067_v41 = vunpack.c.1.s8 %v3178_v7 }
 0x5d9   :  { %2587 = vmatmul.mubr.msk.bf16.vlgmr.msra.gmra.mrb[76].mxu0 %vm848_vm2, %v2631_v25  ;;  %2595 = vmatmul.mubr.msk.bf16.vlgmr.msra.gmra.mrb[76].mxu1 %vm848_vm2, %v2631_v25  ;;  %v2181_v25 = vcvt.s32.f32 %v2117_v4  ;;  %v2188_v35 = vcvt.s32.f32 %v2124_v20  ;;  %v2125_v36 = vand.u32 255, %v2061_v21  ;;  %v2127_v37 = vand.u32 255, %v2063_v22 }
 0x5da   :  { %1781 = vmatprep.mubr.bf16.mxu0 %v2675_v10  ;;  %1894 = vmatprep.mubr.bf16.mxu1 %v2675_v10  ;;  %v3218_v49 = vmul.f32 0.003921569, %v2187_v33  ;;  %v2066_v51 = vunpack.c.1.s8 %v3187_v17  ;;  %v2068_v57 = vunpack.c.1.s8 %v3192_v18  ;;  %v2129_v0 = vand.u32 255, %v2065_v40 }
 0x5db   :  { %v2189_v55 = vcvt.s32.f32 %v2125_v36  ;;  %v2131_v1 = vand.u32 255, %v2067_v41 }
 0x5dc   :  { %v2130_v20 = vand.u32 255, %v2066_v51 }
 0x5e1   :  { %2588 = vmatmul.mubr.msk.bf16.gmra.mrb[80].mxu0 %vm848_vm2, %v2632_v26  ;;  %2596 = vmatmul.mubr.msk.bf16.gmra.mrb[80].mxu1 %vm848_vm2, %v2632_v26  ;;  %v2183_v26 = vcvt.s32.f32 %v2119_v5 }
 0x5e2   :  { %1791 = vmatprep.mubr.bf16.mxu0 %v2675_v10  ;;  %1904 = vmatprep.mubr.bf16.mxu1 %v2675_v10 }
 0x5e3   :  { %v3208_v39 = vmul.f32 0.003921569, %v2183_v26  ;;  %v2132_v26 = vand.u32 255, %v2068_v57 }
 0x5e9   :  { %2589 = vmatmul.mubr.msk.bf16.gmra.mrb[84].mxu0 %vm848_vm2, %v2633_v27  ;;  %2597 = vmatmul.mubr.msk.bf16.gmra.mrb[84].mxu1 %vm848_vm2, %v2633_v27 }
 0x5ea   :  { %1801 = vmatprep.mubr.bf16.mxu0 %v2675_v10  ;;  %1914 = vmatprep.mubr.bf16.mxu1 %v2675_v10 }
 0x5f1   :  { %2590 = vmatmul.mubr.msk.bf16.gmra.mrb[88].mxu0 %vm848_vm2, %v2634_v28  ;;  %2598 = vmatmul.mubr.msk.bf16.gmra.mrb[88].mxu1 %vm848_vm2, %v2634_v28  ;;  %v2184_v28 = vcvt.s32.f32 %v2120_v12 }
 0x5f2   :  { %1811 = vmatprep.mubr.bf16.mxu0 %v2675_v10  ;;  %1924 = vmatprep.mubr.bf16.mxu1 %v2675_v10 }
 0x5f3   :  { %v3214_v43 = vmul.f32 0.003921569, %v2184_v28 }
 0x5f9   :  { %2591 = vmatmul.mubr.msk.bf16.gmra.mrb[92].mxu0 %vm848_vm2, %v2635_v29  ;;  %2599 = vmatmul.mubr.msk.bf16.gmra.mrb[92].mxu1 %vm848_vm2, %v2635_v29  ;;  %v2062_v29 = vunpack.c.0.s8 %v3187_v17 }
 0x5fa   :  { %1821 = vmatprep.mubr.bf16.mxu0 %v2675_v10  ;;  %1934 = vmatprep.mubr.bf16.mxu1 %v2675_v10 }
 0x601   :  { %2592 = vmatmul.mubr.msk.bf16.gmra.mrb[96].mxu0 %vm848_vm2, %v2636_v30  ;;  %2600 = vmatmul.mubr.msk.bf16.gmra.mrb[96].mxu1 %vm848_vm2, %v2636_v30  ;;  %v2064_v30 = vunpack.c.0.s8 %v3192_v18 }
 0x602   :  { %1831 = vmatprep.mubr.bf16.mxu0 %v2675_v10  ;;  %1944 = vmatprep.mubr.bf16.mxu1 %v2675_v10 }
 0x603   :  { %v2128_v45 = vand.u32 255, %v2064_v30  ;;  %v2193_v30 = vcvt.s32.f32 %v2129_v0 }
 0x605   :  { %v2192_v12 = vcvt.s32.f32 %v2128_v45  ;;  %v3238_v57 = vmul.f32 0.003921569, %v2193_v30 }
 0x609   :  { %2593 = vmatmul.mubr.msk.bf16.gmra.mrb[100].mxu0 %vm848_vm2, %v2637_v31  ;;  %2601 = vmatmul.mubr.msk.bf16.gmra.mrb[100].mxu1 %vm848_vm2, %v2637_v31 }
 0x60a   :  { %1841 = vmatprep.mubr.bf16.mxu0 %v2675_v10  ;;  %1954 = vmatprep.mubr.bf16.mxu1 %v2675_v10  ;;  %v2030_v10 = vld [vmem:[%s3593_s23 + $0x8] sm:$0xff] }
 0x60b   :  { %v2046_v38 = vunpack.c.0.s8 %v2030_v10  ;;  %v2050_v46 = vunpack.c.1.s8 %v2030_v10  ;;  %v2054_v56 = vunpack.c.2.s8 %v2030_v10  ;;  %v2058_v61 = vunpack.c.3.s8 %v2030_v10 }
 0x60c   :  { %v3204_v10 = vmul.f32 0.003921569, %v2180_v19 }
 0x60d   :  { %v2110_v44 = vand.u32 255, %v2046_v38  ;;  %v2114_v58 = vand.u32 255, %v2050_v46  ;;  %v2118_v11 = vand.u32 255, %v2054_v56  ;;  %v2122_v16 = vand.u32 255, %v2058_v61  ;;  %v1598_v46 = vpop.permute.xlu0 %1597 }
 0x60e   :  { %v3206_v38 = vmul.f32 0.003921569, %v2181_v25  ;;  %v2191_v56 = vcvt.s32.f32 %v2127_v37 }
 0x60f   :  { %v2174_v54 = vcvt.s32.f32 %v2110_v44  ;;  %v2178_v13 = vcvt.s32.f32 %v2114_v58  ;;  %v2182_v27 = vcvt.s32.f32 %v2118_v11  ;;  %v2186_v34 = vcvt.s32.f32 %v2122_v16 }
 0x610   :  { %v2126_v44 = vand.u32 255, %v2062_v29  ;;  %v3227_v29 = vmul.f32 0.003921569, %v2189_v55 }
 0x611   :  { %2594 = vmatmul.mubr.msk.bf16.gmra.mrb[104].mxu0 %vm848_vm2, %v2638_v32  ;;  %2602 = vmatmul.mubr.msk.bf16.gmra.mrb[104].mxu1 %vm848_vm2, %v2638_v32  ;;  %v3180_v8 = vmul.f32 0.003921569, %v2174_v54  ;;  %v3202_v31 = vmul.f32 0.003921569, %v2178_v13  ;;  %v2185_v32 = vcvt.s32.f32 %v2121_v14  ;;  %v3212_v42 = vmul.f32 0.003921569, %v2182_v27  ;;  %v1608_v36 = vpop.permute.xlu0 %1607 }
 0x612   :  { %v3220_v50 = vmul.f32 0.003921569, %v2186_v34  ;;  %v3223_v54 = vmul.f32 0.003921569, %v2188_v35  ;;  %v2190_v11 = vcvt.s32.f32 %v2126_v44  ;;  %v3231_v35 = vmul.f32 0.003921569, %v2191_v56 }
 0x613   :  { %v3216_v48 = vmul.f32 0.003921569, %v2185_v32  ;;  %v2195_v44 = vcvt.s32.f32 %v2131_v1  ;;  %v2194_v56 = vcvt.s32.f32 %v2130_v20 }
 0x614   :  { %v3233_v41 = vmul.f32 0.003921569, %v2190_v11 }
 0x6ac   :  { %v1773_v52 = vpop.f32.mrb[76].mxu0  ;;  %v1886_v53 = vpop.f32.mrb[76].mxu1 }
 0x6ad   :  { %v1774_v58 = vadd.f32 %v1773_v52, %v1598_v46  ;;  %v1887_v59 = vadd.f32 %v1886_v53, %v1598_v46  ;;  %v1775_v60 = vpop.f32.mrb[77].mxu0  ;;  %v1888_v61 = vpop.f32.mrb[77].mxu1  ;;  %v3236_v53 = vmul.f32 0.003921569, %v2192_v12 }
 0x6ae   :  { %v1776_v2 = vadd.f32 %v1775_v60, %v1598_v46  ;;  %v1889_v3 = vadd.f32 %v1888_v61, %v1598_v46  ;;  %v1777_v4 = vpop.f32.mrb[78].mxu0  ;;  %v1890_v5 = vpop.f32.mrb[78].mxu1 }
 0x6af   :  { %v1965_v13 = vmax.f32 %v1774_v58, 0.0  ;;  %v1967_v14 = vmax.f32 %v1887_v59, 0.0  ;;  %v1778_v15 = vadd.f32 %v1777_v4, %v1603_v47  ;;  %v1779_v16 = vpop.f32.mrb[79].mxu0  ;;  %v1892_v19 = vpop.f32.mrb[79].mxu1  ;;  %v1891_v28 = vadd.f32 %v1890_v5, %v1603_v47 }
 0x6b0   :  { %v1966_v21 = vmax.f32 %v1776_v2, 0.0  ;;  %v1968_v22 = vmax.f32 %v1889_v3, 0.0  ;;  %v1780_v25 = vadd.f32 %v1779_v16, %v1603_v47  ;;  %v1893_v40 = vadd.f32 %v1892_v19, %v1603_v47 }
 0x6b1   :  { %v2301_v27 = vsub.f32 %v1965_v13, %v3166_v62  ;;  %v2303_v32 = vsub.f32 %v1967_v14, %v3168_v63  ;;  %v1969_v34 = vmax.f32 %v1778_v15, 0.0  ;;  %v1971_v63 = vmax.f32 %v1891_v28, 0.0 }
 0x6b2   :  { %v2302_v33 = vsub.f32 %v1966_v21, %v3180_v8  ;;  %v2304_v62 = vsub.f32 %v1968_v22, %v3182_v9  ;;  %v1970_v46 = vmax.f32 %v1780_v25, 0.0  ;;  %v1972_v1 = vmax.f32 %v1893_v40, 0.0 }
 0x6b3   :  { %v2365_v37 = vmul.f32 %v2301_v27, %v2301_v27  ;;  %v2367_v58 = vmul.f32 %v2303_v32, %v2303_v32  ;;  %v2305_v47 = vsub.f32 %v1969_v34, %v3196_v23  ;;  %v3243_v3 = vmul.f32 0.003921569, %v2195_v44 }
 0x6b4   :  { %v2366_v45 = vmul.f32 %v2302_v33, %v2302_v33  ;;  %v1783_v51 = vpop.f32.mrb[80].mxu0  ;;  %v1896_v52 = vpop.f32.mrb[80].mxu1  ;;  %v2196_v4 = vcvt.s32.f32 %v2132_v26  ;;  %v2069_v5 = vunpack.c.2.s8 %v3173_v6  ;;  %v2368_v12 = vmul.f32 %v2304_v62, %v2304_v62 }
 0x6b5   :  { %v1785_v55 = vpop.f32.mrb[81].mxu0  ;;  %v1898_v8 = vpop.f32.mrb[81].mxu1  ;;  %v1784_v60 = vadd.f32 %v1783_v51, %v1608_v36  ;;  %v2306_v13 = vsub.f32 %v1970_v46, %v3202_v31  ;;  %v2307_v15 = vsub.f32 %v1971_v63, %v3198_v24  ;;  %v3248_v23 = vmul.f32 0.003921569, %v2194_v56 }
 0x6b6   :  { %v2429_v59 = vadd.f32 %v2366_v45, %v2365_v37  ;;  %v1787_v61 = vpop.f32.mrb[82].mxu0  ;;  %v1900_v0 = vpop.f32.mrb[82].mxu1  ;;  %v1786_v14 = vadd.f32 %v1785_v55, %v1608_v36  ;;  %v2071_v16 = vunpack.c.2.s8 %v3178_v7  ;;  %v2070_v19 = vunpack.c.2.s8 %v3187_v17 }
 0x6b7   :  { %v1789_v9 = vpop.f32.mrb[83].mxu0  ;;  %v3241_v2 = vpop.f32.mrb[83].mxu1  ;;  %v2369_v21 = vmul.f32 %v2305_v47, %v2305_v47  ;;  %v1973_v22 = vmax.f32 %v1784_v60, 0.0  ;;  %v1897_v25 = vadd.f32 %v1896_v52, %v1608_v36  ;;  %v2308_v27 = vsub.f32 %v1972_v1, %v3204_v10 }
 0x6b8   :  { %v2430_v11 = vadd.f32 %v2429_v59, %v2367_v58  ;;  %v1613_v26 = vpop.permute.xlu1 %1612  ;;  %v3253_v28 = vmul.f32 0.003921569, %v2196_v4  ;;  %v2133_v30 = vand.u32 255, %v2069_v5  ;;  %v2072_v31 = vunpack.c.2.s8 %v3192_v18 }
 0x6b9   :  { %v2370_v24 = vmul.f32 %v2306_v13, %v2306_v13  ;;  %v1974_v33 = vmax.f32 %v1786_v14, 0.0  ;;  %v1899_v34 = vadd.f32 %v1898_v8, %v1608_v36  ;;  %v2371_v44 = vmul.f32 %v2307_v15, %v2307_v15 }
 0x6ba   :  { %v2431_v20 = vadd.f32 %v2430_v11, %v2368_v12  ;;  %v2135_v46 = vand.u32 255, %v2071_v16  ;;  %v2134_v51 = vand.u32 255, %v2070_v19  ;;  %v2073_v10 = vunpack.c.3.s8 %v3173_v6 }
 0x6bb   :  { %v2309_v63 = vsub.f32 %v1973_v22, %v3206_v38  ;;  %v1975_v55 = vmax.f32 %v1897_v25, 0.0  ;;  %v1788_v56 = vadd.f32 %v1787_v61, %v1613_v26  ;;  %v1790_v36 = vadd.f32 %v1789_v9, %v1613_v26 }
 0x6bc   :  { %v2432_v32 = vadd.f32 %v2431_v20, %v2369_v21  ;;  %v1793_v37 = vpop.f32.mrb[84].mxu0  ;;  %v3256_v40 = vpop.f32.mrb[84].mxu1  ;;  %v2197_v60 = vcvt.s32.f32 %v2133_v30  ;;  %v2136_v1 = vand.u32 255, %v2072_v31  ;;  %v2075_v4 = vunpack.c.3.s8 %v3178_v7 }
 0x6bd   :  { %v1795_v45 = vpop.f32.mrb[85].mxu0  ;;  %v3258_v62 = vpop.f32.mrb[85].mxu1  ;;  %v2372_v6 = vmul.f32 %v2308_v27, %v2308_v27  ;;  %v2310_v11 = vsub.f32 %v1974_v33, %v3212_v42  ;;  %v1976_v38 = vmax.f32 %v1899_v34, 0.0  ;;  %v1901_v12 = vadd.f32 %v1900_v0, %v1613_v26 }
 0x6be   :  { %v2433_v52 = vadd.f32 %v2432_v32, %v2370_v24  ;;  %v3262_v58 = vpop.f32.mrb[86].mxu0  ;;  %v3264_v59 = vpop.f32.mrb[86].mxu1  ;;  %v2199_v61 = vcvt.s32.f32 %v2135_v46  ;;  %v2137_v13 = vand.u32 255, %v2073_v10  ;;  %v2074_v14 = vunpack.c.3.s8 %v3187_v17 }
 0x6bf   :  { %v3266_v8 = vpop.f32.mrb[87].mxu0  ;;  %v3268_v47 = vpop.f32.mrb[87].mxu1  ;;  %v2373_v9 = vmul.f32 %v2309_v63, %v2309_v63  ;;  %v2311_v16 = vsub.f32 %v1975_v55, %v3208_v39  ;;  %v1977_v19 = vmax.f32 %v1788_v56, 0.0  ;;  %v1978_v21 = vmax.f32 %v1790_v36, 0.0 }
 0x6c0   :  { %v2434_v5 = vadd.f32 %v2433_v52, %v2371_v44  ;;  %v1618_v20 = vpop.permute.xlu0 %1617  ;;  %v3274_v22 = vmul.f32 0.003921569, %v2197_v60  ;;  %v2198_v7 = vcvt.s32.f32 %v2134_v51  ;;  %v2139_v25 = vand.u32 255, %v2075_v4 }
 0x6c1   :  { %v2374_v30 = vmul.f32 %v2310_v11, %v2310_v11  ;;  %v2312_v42 = vsub.f32 %v1976_v38, %v3214_v43  ;;  %v1903_v0 = vadd.f32 %v3241_v2, %v1613_v26  ;;  %v1979_v32 = vmax.f32 %v1901_v12, 0.0 }
 0x6c2   :  { %v2435_v15 = vadd.f32 %v2434_v5, %v2372_v6  ;;  %v3282_v24 = vmul.f32 0.003921569, %v2199_v61  ;;  %v2200_v34 = vcvt.s32.f32 %v2136_v1  ;;  %v2076_v44 = vunpack.c.3.s8 %v3192_v18 }
 0x6c3   :  { %v2375_v46 = vmul.f32 %v2311_v16, %v2311_v16  ;;  %v2313_v43 = vsub.f32 %v1977_v19, %v3216_v48  ;;  %v1794_v10 = vadd.f32 %v1793_v37, %v1618_v20  ;;  %v2314_v52 = vsub.f32 %v1978_v21, %v3220_v50 }
 0x6c4   :  { %v2436_v27 = vadd.f32 %v2435_v15, %v2373_v9  ;;  %v3278_v31 = vpop.f32.mrb[88].mxu0  ;;  %v3280_v17 = vpop.f32.mrb[88].mxu1  ;;  %v2201_v63 = vcvt.s32.f32 %v2137_v13  ;;  %v2203_v55 = vcvt.s32.f32 %v2139_v25  ;;  %v2138_v36 = vand.u32 255, %v2074_v14  ;;  %v3308_v13 = vld [vmem:[%s3593_s23 + $0x40] sm:$0xff] }
 0x6c5   :  { %v3284_v39 = vpop.f32.mrb[89].mxu0  ;;  %v3286_v33 = vpop.f32.mrb[89].mxu1  ;;  %v2376_v18 = vmul.f32 %v2312_v42, %v2312_v42  ;;  %v1980_v4 = vmax.f32 %v1903_v0, 0.0  ;;  %v1796_v5 = vadd.f32 %v1795_v45, %v1618_v20  ;;  %v2315_v48 = vsub.f32 %v1979_v32, %v3218_v49  ;;  %v3313_v45 = vld [vmem:[%s3593_s23 + $0x50] sm:$0xff] }
 0x6c6   :  { %v2437_v51 = vadd.f32 %v2436_v27, %v2374_v30  ;;  %v3290_v2 = vpop.f32.mrb[90].mxu0  ;;  %v3292_v26 = vpop.f32.mrb[90].mxu1  ;;  %v3300_v37 = vmul.f32 0.003921569, %v2198_v7  ;;  %v3302_v6 = vmul.f32 0.003921569, %v2200_v34  ;;  %v2377_v50 = vmul.f32 %v2313_v43, %v2313_v43 }
 0x6c7   :  { %v3295_v56 = vpop.f32.mrb[91].mxu0  ;;  %v3297_v60 = vpop.f32.mrb[91].mxu1  ;;  %v2140_v11 = vand.u32 255, %v2076_v44  ;;  %v1981_v12 = vmax.f32 %v1794_v10, 0.0  ;;  %v1907_v61 = vadd.f32 %v3256_v40, %v1618_v20  ;;  %v1909_v14 = vadd.f32 %v3258_v62, %v1618_v20  ;;  %v3328_v30 = vld [vmem:[%s3593_s23 + $0x48] sm:$0xff]  ;;  %v3333_v62 = vld [vmem:[%s3593_s23 + $0x58] sm:$0xff] }
 0x6c8   :  { %v2438_v1 = vadd.f32 %v2437_v51, %v2375_v46  ;;  %v1623_v49 = vpop.permute.xlu1 %1622  ;;  %v3316_v15 = vmul.f32 0.003921569, %v2201_v63  ;;  %v3318_v9 = vmul.f32 0.003921569, %v2203_v55  ;;  %v2202_v16 = vcvt.s32.f32 %v2138_v36 }
 0x6c9   :  { %v2378_v40 = vmul.f32 %v2314_v52, %v2314_v52  ;;  %v2316_v21 = vsub.f32 %v1980_v4, %v3223_v54  ;;  %v1982_v7 = vmax.f32 %v1796_v5, 0.0  ;;  %v2379_v20 = vmul.f32 %v2315_v48, %v2315_v48 }
 0x6ca   :  { %v2439_v38 = vadd.f32 %v2438_v1, %v2376_v18  ;;  %v2204_v42 = vcvt.s32.f32 %v2140_v11  ;;  %v2077_v0 = vunpack.c.0.s8 %v3308_v13  ;;  %v2079_v54 = vunpack.c.0.s8 %v3313_v45 }
 0x6cb   :  { %v2317_v46 = vsub.f32 %v1981_v12, %v3227_v29  ;;  %v1983_v51 = vmax.f32 %v1907_v61, 0.0  ;;  %v1798_v43 = vadd.f32 %v3262_v58, %v1623_v49  ;;  %v1984_v63 = vmax.f32 %v1909_v14, 0.0 }
 0x6cc   :  { %v2440_v19 = vadd.f32 %v2439_v38, %v2377_v50  ;;  %v3321_v25 = vpop.f32.mrb[92].mxu0  ;;  %v3323_v27 = vpop.f32.mrb[92].mxu1  ;;  %v3347_v55 = vmul.f32 0.003921569, %v2202_v16  ;;  %v2078_v36 = vunpack.c.0.s8 %v3328_v30  ;;  %v2080_v1 = vunpack.c.0.s8 %v3333_v62 }
 0x6cd   :  { %v3337_v32 = vpop.f32.mrb[93].mxu0  ;;  %v3339_v34 = vpop.f32.mrb[93].mxu1  ;;  %v2380_v29 = vmul.f32 %v2316_v21, %v2316_v21  ;;  %v2318_v48 = vsub.f32 %v1982_v7, %v3233_v41  ;;  %v1800_v58 = vadd.f32 %v3266_v8, %v1623_v49  ;;  %v1911_v11 = vadd.f32 %v3264_v59, %v1623_v49 }
 0x6ce   :  { %v2441_v44 = vadd.f32 %v2440_v19, %v2378_v40  ;;  %v3343_v10 = vpop.f32.mrb[94].mxu0  ;;  %v3345_v52 = vpop.f32.mrb[94].mxu1  ;;  %v3358_v38 = vmul.f32 0.003921569, %v2204_v42  ;;  %v2141_v50 = vand.u32 255, %v2077_v0  ;;  %v2143_v12 = vand.u32 255, %v2079_v54 }
 0x6cf   :  { %v3351_v18 = vpop.f32.mrb[95].mxu0  ;;  %v3353_v4 = vpop.f32.mrb[95].mxu1  ;;  %v2381_v14 = vmul.f32 %v2317_v46, %v2317_v46  ;;  %v2319_v16 = vsub.f32 %v1983_v51, %v3231_v35  ;;  %v1985_v19 = vmax.f32 %v1798_v43, 0.0  ;;  %v2144_v21 = vand.u32 255, %v2080_v1 }
 0x6d0   :  { %3594 = vst [vmem:[#allocation8_spill] sm:$0xff] %v3353_v4  ;;  %v2442_v5 = vadd.f32 %v2441_v44, %v2379_v20  ;;  %v1628_v40 = vpop.permute.xlu0 %1627  ;;  %v2320_v4 = vsub.f32 %v1984_v63, %v3236_v53  ;;  %v2142_v20 = vand.u32 255, %v2078_v36  ;;  %v2081_v41 = vunpack.c.1.s8 %v3308_v13 }
 0x6d1   :  { %v2382_v8 = vmul.f32 %v2318_v48, %v2318_v48  ;;  %v1986_v44 = vmax.f32 %v1800_v58, 0.0  ;;  %v1913_v59 = vadd.f32 %v3268_v47, %v1623_v49  ;;  %v1987_v54 = vmax.f32 %v1911_v11, 0.0 }
 0x6d2   :  { %v2443_v61 = vadd.f32 %v2442_v5, %v2380_v29  ;;  %v2205_v46 = vcvt.s32.f32 %v2141_v50  ;;  %v2083_v35 = vunpack.c.1.s8 %v3313_v45  ;;  %v2082_v51 = vunpack.c.1.s8 %v3328_v30 }
 0x6d3   :  { %v2383_v63 = vmul.f32 %v2319_v16, %v2319_v16  ;;  %v2321_v1 = vsub.f32 %v1985_v19, %v3238_v57  ;;  %v1804_v47 = vadd.f32 %v3278_v31, %v1628_v40  ;;  %v2384_v29 = vmul.f32 %v2320_v4, %v2320_v4 }
 0x6d4   :  { %v2444_v7 = vadd.f32 %v2443_v61, %v2381_v14  ;;  %v3364_v42 = vpop.f32.mrb[96].mxu0  ;;  %v3366_v0 = vpop.f32.mrb[96].mxu1  ;;  %v2207_v48 = vcvt.s32.f32 %v2143_v12  ;;  %v2145_v58 = vand.u32 255, %v2081_v41  ;;  %v2084_v11 = vunpack.c.1.s8 %v3333_v62 }
 0x6d5   :  { %v3370_v53 = vpop.f32.mrb[97].mxu0  ;;  %v3372_v43 = vpop.f32.mrb[97].mxu1  ;;  %v2322_v16 = vsub.f32 %v1986_v44, %v3248_v23  ;;  %v1806_v57 = vadd.f32 %v3284_v39, %v1628_v40  ;;  %v2323_v31 = vsub.f32 %v1987_v54, %v3243_v3  ;;  %v2206_v19 = vcvt.s32.f32 %v2142_v20 }
 0x6d6   :  { %3595 = vst [vmem:[#allocation9_spill] sm:$0xff] %v3372_v43  ;;  %v2445_v36 = vadd.f32 %v2444_v7, %v2382_v8  ;;  %v3376_v49 = vpop.f32.mrb[98].mxu0  ;;  %v3378_v5 = vpop.f32.mrb[98].mxu1  ;;  %v1988_v7 = vmax.f32 %v1913_v59, 0.0  ;;  %v2208_v8 = vcvt.s32.f32 %v2144_v21  ;;  %v2385_v12 = vmul.f32 %v2321_v1, %v2321_v1 }
 0x6d7   :  { %3596 = vst [vmem:[#allocation10_spill] sm:$0xff] %v3376_v49  ;;  %3597 = vst [vmem:[#allocation11_spill] sm:$0xff] %v3378_v5  ;;  %v3381_v50 = vpop.f32.mrb[99].mxu0  ;;  %v3383_v61 = vpop.f32.mrb[99].mxu1  ;;  %v2147_v5 = vand.u32 255, %v2083_v35  ;;  %v1989_v41 = vmax.f32 %v1804_v47, 0.0  ;;  %v1917_v49 = vadd.f32 %v3280_v17, %v1628_v40  ;;  %v2386_v39 = vmul.f32 %v2322_v16, %v2322_v16 }
 0x6d8   :  { %3598 = vst [vmem:[#allocation12_spill] sm:$0xff] %v3381_v50  ;;  %3599 = vst [vmem:[#allocation13_spill] sm:$0xff] %v3383_v61  ;;  %v2446_v14 = vadd.f32 %v2445_v36, %v2383_v63  ;;  %v1633_v43 = vpop.permute.xlu1 %1632  ;;  %v1919_v50 = vadd.f32 %v3286_v33, %v1628_v40  ;;  %v3390_v61 = vmul.f32 0.003921569, %v2205_v46  ;;  %v3392_v63 = vmul.f32 0.003921569, %v2207_v48 }
 0x6d9   :  { %v2146_v23 = vand.u32 255, %v2082_v51  ;;  %v2324_v3 = vsub.f32 %v1988_v7, %v3253_v28  ;;  %v1990_v20 = vmax.f32 %v1806_v57, 0.0  ;;  %v1808_v54 = vadd.f32 %v3290_v2, %v1633_v43 }
 0x6da   :  { %v2447_v4 = vadd.f32 %v2446_v14, %v2384_v29  ;;  %v3400_v17 = vmul.f32 0.003921569, %v2206_v19  ;;  %v2209_v35 = vcvt.s32.f32 %v2145_v58  ;;  %v2148_v33 = vand.u32 255, %v2084_v11 }
 0x6db   :  { %v2387_v51 = vmul.f32 %v2323_v31, %v2323_v31  ;;  %v2325_v1 = vsub.f32 %v1989_v41, %v3274_v22  ;;  %v1991_v28 = vmax.f32 %v1917_v49, 0.0  ;;  %v1992_v48 = vmax.f32 %v1919_v50, 0.0  ;;  %v1638_v41 = vpop.permute.xlu0 %1637 }
 0x6dc   :  { %v2448_v44 = vadd.f32 %v2447_v4, %v2385_v12  ;;  %v3395_v21 = vpop.f32.mrb[100].mxu0  ;;  %v3397_v59 = vpop.f32.mrb[100].mxu1  ;;  %v3411_v14 = vmul.f32 0.003921569, %v2208_v8  ;;  %v2211_v2 = vcvt.s32.f32 %v2147_v5  ;;  %v2388_v11 = vmul.f32 %v2324_v3, %v2324_v3 }
 0x6dd   :  { %v3402_v40 = vpop.f32.mrb[101].mxu0  ;;  %v3404_v46 = vpop.f32.mrb[101].mxu1  ;;  %v2326_v57 = vsub.f32 %v1990_v20, %v3300_v37  ;;  %v1810_v31 = vadd.f32 %v3295_v56, %v1633_v43  ;;  %v1993_v22 = vmax.f32 %v1808_v54, 0.0  ;;  %v3419_v49 = vmul.f32 0.003921569, %v2209_v35 }
 0x6de   :  { %v2449_v36 = vadd.f32 %v2448_v44, %v2386_v39  ;;  %v3407_v47 = vpop.f32.mrb[102].mxu0  ;;  %v3409_v29 = vpop.f32.mrb[102].mxu1  ;;  %v2210_v19 = vcvt.s32.f32 %v2146_v23  ;;  %v2212_v4 = vcvt.s32.f32 %v2148_v33  ;;  %v2389_v50 = vmul.f32 %v2325_v1, %v2325_v1 }
 0x6df   :  { %v3413_v16 = vpop.f32.mrb[103].mxu0  ;;  %v3415_v58 = vpop.f32.mrb[103].mxu1  ;;  %v2327_v8 = vsub.f32 %v1991_v28, %v3282_v24  ;;  %v1921_v5 = vadd.f32 %v3292_v26, %v1633_v43  ;;  %v2328_v44 = vsub.f32 %v1992_v48, %v3302_v6  ;;  %v3424_v39 = vmul.f32 0.003921569, %v2211_v2 }
 0x6e0   :  { %v2450_v7 = vadd.f32 %v2449_v36, %v2387_v51  ;;  %v2085_v37 = vunpack.c.2.s8 %v3308_v13  ;;  %v2087_v56 = vunpack.c.2.s8 %v3313_v45  ;;  %v2390_v20 = vmul.f32 %v2326_v57, %v2326_v57 }
 0x6e1   :  { %v1994_v54 = vmax.f32 %v1810_v31, 0.0  ;;  %v1923_v23 = vadd.f32 %v3297_v60, %v1633_v43  ;;  %v2329_v24 = vsub.f32 %v1993_v22, %v3316_v15  ;;  %v3434_v26 = vmul.f32 0.003921569, %v2210_v19 }
 0x6e2   :  { %v2451_v12 = vadd.f32 %v2450_v7, %v2388_v11  ;;  %v3436_v6 = vmul.f32 0.003921569, %v2212_v4  ;;  %v2086_v51 = vunpack.c.2.s8 %v3328_v30  ;;  %v2391_v28 = vmul.f32 %v2327_v8, %v2327_v8 }
 0x6e3   :  { %v1995_v2 = vmax.f32 %v1921_v5, 0.0  ;;  %v1814_v60 = vadd.f32 %v3321_v25, %v1638_v41  ;;  %v2392_v15 = vmul.f32 %v2328_v44, %v2328_v44  ;;  %v2149_v7 = vand.u32 255, %v2085_v37 }
 0x6e4   :  { %v2452_v3 = vadd.f32 %v2451_v12, %v2389_v50  ;;  %v3429_v35 = vpop.f32.mrb[104].mxu0  ;;  %v3431_v33 = vpop.f32.mrb[104].mxu1  ;;  %v2151_v57 = vand.u32 255, %v2087_v56  ;;  %v2088_v31 = vunpack.c.2.s8 %v3333_v62  ;;  %v2330_v12 = vsub.f32 %v1994_v54, %v3347_v55 }
 0x6e5   :  { %v3439_v36 = vpop.f32.mrb[105].mxu0  ;;  %v3441_v1 = vpop.f32.mrb[105].mxu1  ;;  %v1996_v50 = vmax.f32 %v1923_v23, 0.0  ;;  %v1816_v8 = vadd.f32 %v3337_v32, %v1638_v41  ;;  %v1927_v25 = vadd.f32 %v3323_v27, %v1638_v41  ;;  %v2150_v5 = vand.u32 255, %v2086_v51 }
 0x6e6   :  { %v2453_v48 = vadd.f32 %v2452_v3, %v2390_v20  ;;  %v3444_v43 = vpop.f32.mrb[106].mxu0  ;;  %v3446_v11 = vpop.f32.mrb[106].mxu1  ;;  %v2089_v3 = vunpack.c.3.s8 %v3308_v13  ;;  %v2091_v44 = vunpack.c.3.s8 %v3313_v45  ;;  %v2393_v56 = vmul.f32 %v2329_v24, %v2329_v24 }
 0x6e7   :  { %3600 = vst [vmem:[#allocation14_spill] sm:$0xff] %v3446_v11  ;;  %v3449_v22 = vpop.f32.mrb[107].mxu0  ;;  %v3451_v19 = vpop.f32.mrb[107].mxu1  ;;  %v2331_v20 = vsub.f32 %v1995_v2, %v3318_v9  ;;  %v1997_v11 = vmax.f32 %v1814_v60, 0.0  ;;  %v2090_v55 = vunpack.c.3.s8 %v3328_v30  ;;  %v2092_v54 = vunpack.c.3.s8 %v3333_v62 }
 0x6e8   :  { %3601 = vst [vmem:[#allocation15_spill] sm:$0xff] %v3451_v19  ;;  %v2454_v4 = vadd.f32 %v2453_v48, %v2391_v28  ;;  %v1929_v19 = vadd.f32 %v3339_v34, %v1638_v41  ;;  %v2152_v28 = vand.u32 255, %v2088_v31  ;;  %v2394_v23 = vmul.f32 %v2330_v12, %v2330_v12  ;;  %v1643_v13 = vpop.permute.xlu1 %1642 }
 0x6e9   :  { %v2332_v27 = vsub.f32 %v1996_v50, %v3358_v38  ;;  %v1998_v51 = vmax.f32 %v1816_v8, 0.0  ;;  %v1999_v48 = vmax.f32 %v1927_v25, 0.0  ;;  %v2213_v45 = vcvt.s32.f32 %v2149_v7 }
 0x6ea   :  { %v2455_v37 = vadd.f32 %v2454_v4, %v2392_v15  ;;  %v2215_v15 = vcvt.s32.f32 %v2151_v57  ;;  %v2153_v24 = vand.u32 255, %v2089_v3  ;;  %v2395_v4 = vmul.f32 %v2331_v20, %v2331_v20 }
 0x6eb   :  { %v2333_v2 = vsub.f32 %v1997_v11, %v3390_v61  ;;  %v1818_v34 = vadd.f32 %v3343_v10, %v1643_v13  ;;  %v2000_v41 = vmax.f32 %v1929_v19, 0.0  ;;  %v2214_v30 = vcvt.s32.f32 %v2150_v5 }
 0x6ec   :  { %v2456_v32 = vadd.f32 %v2455_v37, %v2393_v56  ;;  %v2216_v60 = vcvt.s32.f32 %v2152_v28  ;;  %v2155_v62 = vand.u32 255, %v2091_v44  ;;  %v2396_v31 = vmul.f32 %v2332_v27, %v2332_v27  ;;  %v3602_v28 = vld [vmem:[#allocation8_spill] sm:$0xff] }
 0x6ed   :  { %v2334_v38 = vsub.f32 %v1998_v51, %v3400_v17  ;;  %v1820_v50 = vadd.f32 %v3351_v18, %v1643_v13  ;;  %v2335_v7 = vsub.f32 %v1999_v48, %v3392_v63  ;;  %v2277_v57 = vmul.f32 0.003921569, %v2213_v45  ;;  %v3478_v48 = vld [vmem:[%s3593_s23 + $0x60] sm:$0xff] }
 0x6ee   :  { %v2457_v9 = vadd.f32 %v2456_v32, %v2394_v23  ;;  %v2154_v8 = vand.u32 255, %v2090_v55  ;;  %v2156_v25 = vand.u32 255, %v2092_v54  ;;  %v2397_v37 = vmul.f32 %v2333_v2, %v2333_v2  ;;  %v1648_v32 = vpop.permute.xlu0 %1647 }
 0x6ef   :  { %v2001_v61 = vmax.f32 %v1818_v34, 0.0  ;;  %v1931_v10 = vadd.f32 %v3345_v52, %v1643_v13  ;;  %v2336_v11 = vsub.f32 %v2000_v41, %v3411_v14  ;;  %v2279_v19 = vmul.f32 0.003921569, %v2215_v15  ;;  %v3494_v34 = vld [vmem:[%s3593_s23 + $0x68] sm:$0xff]  ;;  %v3499_v41 = vld [vmem:[%s3593_s23 + $0x78] sm:$0xff] }
 0x6f0   :  { %v2458_v12 = vadd.f32 %v2457_v9, %v2395_v4  ;;  %v2217_v5 = vcvt.s32.f32 %v2153_v24  ;;  %v2219_v44 = vcvt.s32.f32 %v2155_v62  ;;  %v2398_v20 = vmul.f32 %v2334_v38, %v2334_v38 }
 0x6f1   :  { %v2002_v17 = vmax.f32 %v1820_v50, 0.0  ;;  %v1933_v18 = vadd.f32 %v3602_v28, %v1643_v13  ;;  %v2399_v63 = vmul.f32 %v2335_v7, %v2335_v7  ;;  %v2278_v23 = vmul.f32 0.003921569, %v2214_v30  ;;  %v3483_v13 = vld [vmem:[%s3593_s23 + $0x70] sm:$0xff]  ;;  %s2676_s23 = smov [#allocation2]  }
 0x6f2   :  { %v2459_v3 = vadd.f32 %v2458_v12, %v2396_v31  ;;  %v3471_v55 = vmul.f32 0.003921569, %v2216_v60  ;;  %v2218_v54 = vcvt.s32.f32 %v2154_v8  ;;  %v2337_v51 = vsub.f32 %v2001_v61, %v3419_v49  ;;  %v3603_v61 = vld [vmem:[#allocation9_spill] sm:$0xff]  ;;  %s2508_s20 = sshll.u32 %s2676_s23, 4  ;;  %s2509_s20 = int_to_ptr.vmem [resolvable:$true] %s2508_s20 }
 0x6f3   :  { %v2003_v52 = vmax.f32 %v1931_v10, 0.0  ;;  %v1824_v14 = vadd.f32 %v3364_v42, %v1648_v32  ;;  %v1826_v45 = vadd.f32 %v3370_v53, %v1648_v32  ;;  %v3486_v15 = vmul.f32 0.003921569, %v2217_v5  ;;  %s2639_s21 = scalar_lea.vmem %s2509_s20, 1024  ;;  %p2644_p1 = scmp.lt.s32.totalorder %s2509_s20, %s2509_s20 }
 0x6f4   :  { %v2460_v56 = vadd.f32 %v2459_v3, %v2397_v37  ;;  %v3488_v24 = vmul.f32 0.003921569, %v2219_v44  ;;  %v2220_v49 = vcvt.s32.f32 %v2156_v25  ;;  %v2400_v4 = vmul.f32 %v2336_v11, %v2336_v11  ;;  %v1653_v11 = vpop.permute.xlu1 %1652  ;;  %p2640_p0 = scmp.ne.s32.totalorder %s2509_s20, %s2639_s21  ;;  %p2645_p2 = scmp.lt.s32.totalorder %s2639_s21, %s2639_s21 }
 0x6f5   :  { %v2338_v42 = vsub.f32 %v2002_v17, %v3434_v26  ;;  %v2004_v2 = vmax.f32 %v1933_v18, 0.0  ;;  %v1937_v53 = vadd.f32 %v3366_v0, %v1648_v32  ;;  %v3502_v30 = vmul.f32 0.003921569, %v2218_v54  ;;  %v3604_v18 = vld [vmem:[#allocation10_spill] sm:$0xff] }
 0x6f6   :  { %v2461_v27 = vadd.f32 %v2460_v56, %v2398_v20  ;;  %v2093_v60 = vunpack.c.0.s8 %v3478_v48  ;;  %v2095_v62 = vunpack.c.0.s8 %v3483_v13  ;;  %v2401_v31 = vmul.f32 %v2337_v51, %v2337_v51  ;;  %p2646_p3 = por %p2645_p2, %p2644_p1 }
 0x6f7   :  { %v2339_v12 = vsub.f32 %v2003_v52, %v3424_v39  ;;  %v2005_v38 = vmax.f32 %v1824_v14, 0.0  ;;  %v2006_v50 = vmax.f32 %v1826_v45, 0.0  ;;  %v3507_v7 = vmul.f32 0.003921569, %v2220_v49 }
 0x6f8   :  { %v2462_v9 = vadd.f32 %v2461_v27, %v2399_v63  ;;  %v2094_v8 = vunpack.c.0.s8 %v3494_v34  ;;  %v2096_v25 = vunpack.c.0.s8 %v3499_v41  ;;  %v2402_v0 = vmul.f32 %v2338_v42, %v2338_v42  ;;  %p2647_p4 = pnand %p2646_p3, %p2640_p0 }
 0x6f9   :  { %v2340_v37 = vsub.f32 %v2004_v2, %v3436_v6  ;;  %v1939_v10 = vadd.f32 %v3603_v61, %v1648_v32  ;;  %v2007_v5 = vmax.f32 %v1937_v53, 0.0  ;;  %v2157_v44 = vand.u32 255, %v2093_v60  ;;  %v3605_v32 = vld [vmem:[#allocation12_spill] sm:$0xff] }
 0x6fa   :  { %v2463_v26 = vadd.f32 %v2462_v9, %v2400_v4  ;;  %v2159_v56 = vand.u32 255, %v2095_v62  ;;  %v2097_v39 = vunpack.c.1.s8 %v3478_v48  ;;  %v2403_v20 = vmul.f32 %v2339_v12, %v2339_v12 }
 0x6fb   :  { %v2341_v28 = vsub.f32 %v2005_v38, %v2277_v57  ;;  %v1828_v63 = vadd.f32 %v3604_v18, %v1653_v11  ;;  %v2342_v54 = vsub.f32 %v2006_v50, %v2278_v23  ;;  %v2158_v27 = vand.u32 255, %v2094_v8  ;;  %v3606_v57 = vld [vmem:[#allocation11_spill] sm:$0xff] }
 0x6fc   :  { %v2464_v3 = vadd.f32 %v2463_v26, %v2401_v31  ;;  %v2160_v51 = vand.u32 255, %v2096_v25  ;;  %v2099_v52 = vunpack.c.1.s8 %v3483_v13  ;;  %v2404_v14 = vmul.f32 %v2340_v37, %v2340_v37  ;;  %v3607_v31 = vld [vmem:[#allocation13_spill] sm:$0xff] }
 0x6fd   :  { %v2008_v45 = vmax.f32 %v1939_v10, 0.0  ;;  %v1830_v49 = vadd.f32 %v3605_v32, %v1653_v11  ;;  %v2343_v4 = vsub.f32 %v2007_v5, %v2279_v19  ;;  %v2221_v9 = vcvt.s32.f32 %v2157_v44  ;;  %v1658_v19 = vpop.permute.xlu0 %1657 }
 0x6fe   :  { %v2465_v17 = vadd.f32 %v2464_v3, %v2402_v0  ;;  %v2223_v42 = vcvt.s32.f32 %v2159_v56  ;;  %v2161_v2 = vand.u32 255, %v2097_v39  ;;  %v2405_v60 = vmul.f32 %v2341_v28, %v2341_v28 }
 0x6ff   :  { %v2009_v62 = vmax.f32 %v1828_v63, 0.0  ;;  %v1941_v26 = vadd.f32 %v3606_v57, %v1653_v11  ;;  %v1943_v23 = vadd.f32 %v3607_v31, %v1653_v11  ;;  %v2222_v12 = vcvt.s32.f32 %v2158_v27 }
 0x700   :  { %v2466_v6 = vadd.f32 %v2465_v17, %v2403_v20  ;;  %v2224_v38 = vcvt.s32.f32 %v2160_v51  ;;  %v2098_v50 = vunpack.c.1.s8 %v3494_v34  ;;  %v2406_v25 = vmul.f32 %v2342_v54, %v2342_v54 }
 0x701   :  { %v2344_v3 = vsub.f32 %v2008_v45, %v3471_v55  ;;  %v2010_v0 = vmax.f32 %v1830_v49, 0.0  ;;  %v2407_v37 = vmul.f32 %v2343_v4, %v2343_v4  ;;  %v2285_v61 = vmul.f32 0.003921569, %v2221_v9 }
 0x702   :  { %v2467_v53 = vadd.f32 %v2466_v6, %v2404_v14  ;;  %v2163_v10 = vand.u32 255, %v2099_v52  ;;  %v2100_v5 = vunpack.c.1.s8 %v3499_v41  ;;  %v2345_v56 = vsub.f32 %v2009_v62, %v3486_v15 }
 0x703   :  { %v2011_v39 = vmax.f32 %v1941_v26, 0.0  ;;  %v1834_v11 = vadd.f32 %v3395_v21, %v1658_v19  ;;  %v2012_v20 = vmax.f32 %v1943_v23, 0.0  ;;  %v2287_v17 = vmul.f32 0.003921569, %v2223_v42 }
 0x704   :  { %v2468_v8 = vadd.f32 %v2467_v53, %v2405_v60  ;;  %v2225_v28 = vcvt.s32.f32 %v2161_v2  ;;  %v2162_v18 = vand.u32 255, %v2098_v50  ;;  %v2408_v63 = vmul.f32 %v2344_v3, %v2344_v3  ;;  %v1663_v60 = vpop.permute.xlu1 %1662 }
 0x705   :  { %v2346_v55 = vsub.f32 %v2010_v0, %v3502_v30  ;;  %v1836_v27 = vadd.f32 %v3402_v40, %v1658_v19  ;;  %v1947_v51 = vadd.f32 %v3397_v59, %v1658_v19  ;;  %v2286_v52 = vmul.f32 0.003921569, %v2222_v12 }
 0x706   :  { %v2469_v44 = vadd.f32 %v2468_v8, %v2406_v25  ;;  %v2227_v14 = vcvt.s32.f32 %v2163_v10  ;;  %v2164_v6 = vand.u32 255, %v2100_v5  ;;  %v2409_v15 = vmul.f32 %v2345_v56, %v2345_v56 }
 0x707   :  { %v2347_v32 = vsub.f32 %v2011_v39, %v3488_v24  ;;  %v2013_v21 = vmax.f32 %v1834_v11, 0.0  ;;  %v2348_v49 = vsub.f32 %v2012_v20, %v3507_v7  ;;  %v2288_v4 = vmul.f32 0.003921569, %v2224_v38 }
 0x708   :  { %v2470_v54 = vadd.f32 %v2469_v44, %v2407_v37  ;;  %v2289_v9 = vmul.f32 0.003921569, %v2225_v28  ;;  %v2226_v42 = vcvt.s32.f32 %v2162_v18  ;;  %v2410_v53 = vmul.f32 %v2346_v55, %v2346_v55  ;;  %v1668_v18 = vpop.permute.xlu0 %1667 }
 0x709   :  { %v2014_v30 = vmax.f32 %v1836_v27, 0.0  ;;  %v1949_v40 = vadd.f32 %v3404_v46, %v1658_v19  ;;  %v2015_v59 = vmax.f32 %v1947_v51, 0.0  ;;  %v2291_v62 = vmul.f32 0.003921569, %v2227_v14 }
 0x70a   :  { %v2471_v45 = vadd.f32 %v2470_v54, %v2408_v63  ;;  %v2228_v57 = vcvt.s32.f32 %v2164_v6  ;;  %v2101_v26 = vunpack.c.2.s8 %v3478_v48  ;;  %v2411_v31 = vmul.f32 %v2347_v32, %v2347_v32 }
 0x70b   :  { %v2349_v24 = vsub.f32 %v2013_v21, %v2285_v61  ;;  %v1838_v12 = vadd.f32 %v3407_v47, %v1663_v60  ;;  %v2412_v7 = vmul.f32 %v2348_v49, %v2348_v49  ;;  %v2290_v38 = vmul.f32 0.003921569, %v2226_v42 }
 0x70c   :  { %v2472_v2 = vadd.f32 %v2471_v45, %v2409_v15  ;;  %v2103_v50 = vunpack.c.2.s8 %v3483_v13  ;;  %v2102_v8 = vunpack.c.2.s8 %v3494_v34  ;;  %v2350_v3 = vsub.f32 %v2014_v30, %v2286_v52 }
 0x70d   :  { %v2016_v46 = vmax.f32 %v1949_v40, 0.0  ;;  %v1840_v0 = vadd.f32 %v3413_v16, %v1663_v60  ;;  %v2351_v19 = vsub.f32 %v2015_v59, %v2287_v17  ;;  %v2292_v37 = vmul.f32 0.003921569, %v2228_v57 }
 0x70e   :  { %v2473_v23 = vadd.f32 %v2472_v2, %v2410_v53  ;;  %v2165_v10 = vand.u32 255, %v2101_v26  ;;  %v2104_v5 = vunpack.c.2.s8 %v3499_v41  ;;  %v2413_v61 = vmul.f32 %v2349_v24, %v2349_v24 }
 0x70f   :  { %v2017_v56 = vmax.f32 %v1838_v12, 0.0  ;;  %v1951_v47 = vadd.f32 %v3409_v29, %v1663_v60  ;;  %v1953_v39 = vadd.f32 %v3415_v58, %v1663_v60  ;;  %v2167_v11 = vand.u32 255, %v2103_v50 }
 0x710   :  { %v2474_v25 = vadd.f32 %v2473_v23, %v2411_v31  ;;  %v2166_v20 = vand.u32 255, %v2102_v8  ;;  %v2105_v28 = vunpack.c.3.s8 %v3478_v48  ;;  %v2414_v54 = vmul.f32 %v2350_v3, %v2350_v3 }
 0x711   :  { %v2352_v16 = vsub.f32 %v2016_v46, %v2288_v4  ;;  %v2018_v17 = vmax.f32 %v1840_v0, 0.0  ;;  %v1844_v55 = vadd.f32 %v3429_v35, %v1668_v18  ;;  %v2229_v27 = vcvt.s32.f32 %v2165_v10 }
 0x712   :  { %v2475_v44 = vadd.f32 %v2474_v25, %v2412_v7  ;;  %v2168_v51 = vand.u32 255, %v2104_v5  ;;  %v2107_v52 = vunpack.c.3.s8 %v3483_v13  ;;  %v2415_v14 = vmul.f32 %v2351_v19, %v2351_v19 }
 0x713   :  { %v2353_v29 = vsub.f32 %v2017_v56, %v2289_v9  ;;  %v2019_v45 = vmax.f32 %v1951_v47, 0.0  ;;  %v2020_v58 = vmax.f32 %v1953_v39, 0.0  ;;  %v2231_v15 = vcvt.s32.f32 %v2167_v11 }
 0x714   :  { %v2476_v63 = vadd.f32 %v2475_v44, %v2413_v61  ;;  %v2230_v32 = vcvt.s32.f32 %v2166_v20  ;;  %v2106_v48 = vunpack.c.3.s8 %v3494_v34  ;;  %v2416_v21 = vmul.f32 %v2352_v16, %v2352_v16  ;;  %v3608_v20 = vld [vmem:[#allocation14_spill] sm:$0xff] }
 0x715   :  { %v2354_v42 = vsub.f32 %v2018_v17, %v2290_v38  ;;  %v1846_v4 = vadd.f32 %v3439_v36, %v1668_v18  ;;  %v2021_v2 = vmax.f32 %v1844_v55, 0.0  ;;  %v2293_v35 = vmul.f32 0.003921569, %v2229_v27  ;;  %v1673_v36 = vpop.permute.xlu1 %1672 }
 0x716   :  { %v2477_v6 = vadd.f32 %v2476_v63, %v2414_v54  ;;  %v2169_v53 = vand.u32 255, %v2105_v28  ;;  %v2108_v30 = vunpack.c.3.s8 %v3499_v41  ;;  %v2417_v40 = vmul.f32 %v2353_v29, %v2353_v29  ;;  %v3609_v63 = vld [vmem:[#allocation15_spill] sm:$0xff] }
 0x717   :  { %v2355_v60 = vsub.f32 %v2019_v45, %v2291_v62  ;;  %v1957_v9 = vadd.f32 %v3431_v33, %v1668_v18  ;;  %v2356_v59 = vsub.f32 %v2020_v58, %v2292_v37  ;;  %v2294_v57 = vmul.f32 0.003921569, %v2230_v32 }
 0x718   :  { %v2478_v49 = vadd.f32 %v2477_v6, %v2415_v14  ;;  %v2232_v26 = vcvt.s32.f32 %v2168_v51  ;;  %v2170_v31 = vand.u32 255, %v2106_v48  ;;  %v2418_v23 = vmul.f32 %v2354_v42, %v2354_v42 }
 0x719   :  { %v2022_v24 = vmax.f32 %v1846_v4, 0.0  ;;  %v1959_v12 = vadd.f32 %v3441_v1, %v1668_v18  ;;  %v2357_v7 = vsub.f32 %v2021_v2, %v2293_v35  ;;  %v2295_v38 = vmul.f32 0.003921569, %v2231_v15 }
 0x71a   :  { %v2479_v13 = vadd.f32 %v2478_v49, %v2416_v21  ;;  %v2233_v50 = vcvt.s32.f32 %v2169_v53  ;;  %v2171_v8 = vand.u32 255, %v2107_v52  ;;  %v2419_v41 = vmul.f32 %v2355_v60, %v2355_v60 }
 0x71b   :  { %v2023_v3 = vmax.f32 %v1957_v9, 0.0  ;;  %v1848_v62 = vadd.f32 %v3444_v43, %v1673_v36  ;;  %v2420_v33 = vmul.f32 %v2356_v59, %v2356_v59  ;;  %v2296_v46 = vmul.f32 0.003921569, %v2232_v26 }
 0x71c   :  { %v2480_v34 = vadd.f32 %v2479_v13, %v2417_v40  ;;  %v2234_v0 = vcvt.s32.f32 %v2170_v31  ;;  %v2172_v19 = vand.u32 255, %v2108_v30  ;;  %v2358_v10 = vsub.f32 %v2022_v24, %v2294_v57 }
 0x71d   :  { %v2024_v5 = vmax.f32 %v1959_v12, 0.0  ;;  %v1850_v44 = vadd.f32 %v3449_v22, %v1673_v36  ;;  %v2421_v1 = vmul.f32 %v2357_v7, %v2357_v7  ;;  %v2297_v61 = vmul.f32 0.003921569, %v2233_v50 }
 0x71e   :  { %v2481_v25 = vadd.f32 %v2480_v34, %v2418_v23  ;;  %v2235_v56 = vcvt.s32.f32 %v2171_v8  ;;  %v2359_v39 = vsub.f32 %v2023_v3, %v2295_v38  ;;  %v2025_v11 = vmax.f32 %v1848_v62, 0.0 }
 0x71f   :  { %v1961_v28 = vadd.f32 %v3608_v20, %v1673_v36  ;;  %v2298_v18 = vmul.f32 0.003921569, %v2234_v0  ;;  %v1963_v43 = vadd.f32 %v3609_v63, %v1673_v36  ;;  %v2236_v54 = vcvt.s32.f32 %v2172_v19 }
 0x720   :  { %v2482_v37 = vadd.f32 %v2481_v25, %v2419_v41  ;;  %v2422_v17 = vmul.f32 %v2358_v10, %v2358_v10  ;;  %v2360_v55 = vsub.f32 %v2024_v5, %v2296_v46  ;;  %v2026_v27 = vmax.f32 %v1850_v44, 0.0 }
 0x721   :  { %v2299_v51 = vmul.f32 0.003921569, %v2235_v56  ;;  %v2423_v52 = vmul.f32 %v2359_v39, %v2359_v39  ;;  %v2361_v22 = vsub.f32 %v2025_v11, %v2297_v61  ;;  %v2027_v6 = vmax.f32 %v1961_v28, 0.0 }
 0x722   :  { %v2483_v47 = vadd.f32 %v2482_v37, %v2420_v33  ;;  %v2300_v29 = vmul.f32 0.003921569, %v2236_v54  ;;  %v2424_v45 = vmul.f32 %v2360_v55, %v2360_v55  ;;  %v2362_v15 = vsub.f32 %v2026_v27, %v2298_v18 }
 0x723   :  { %v2028_v32 = vmax.f32 %v1963_v43, 0.0  ;;  %v2425_v21 = vmul.f32 %v2361_v22, %v2361_v22  ;;  %v2363_v49 = vsub.f32 %v2027_v6, %v2299_v51 }
 0x724   :  { %v2484_v16 = vadd.f32 %v2483_v47, %v2421_v1  ;;  %v2426_v4 = vmul.f32 %v2362_v15, %v2362_v15 }
 0x725   :  { %v2364_v2 = vsub.f32 %v2028_v32, %v2300_v29  ;;  %v2427_v35 = vmul.f32 %v2363_v49, %v2363_v49 }
 0x726   :  { %v2485_v14 = vadd.f32 %v2484_v16, %v2422_v17 }
 0x727   :  { %v2428_v30 = vmul.f32 %v2364_v2, %v2364_v2 }
 0x728   :  { %v2486_v58 = vadd.f32 %v2485_v14, %v2423_v52 }
 0x72a   :  { %v2487_v48 = vadd.f32 %v2486_v58, %v2424_v45 }
 0x72c   :  { %v2488_v42 = vadd.f32 %v2487_v48, %v2425_v21 }
 0x72e   :  { %v2489_v53 = vadd.f32 %v2488_v42, %v2426_v4 }
 0x730   :  { %v2490_v13 = vadd.f32 %v2489_v53, %v2427_v35 }
 0x732   :  { %v2491_v40 = vadd.f32 %v2490_v13, %v2428_v30 }
 0x734   :  { %2492 = vadd.xlane.f32.xlu0 %v2491_v40 }
 0x735   :  { %2650 = shalt.err (!%p2647_p4)
}
 0x736   :  { %s2651_s13 = scalar_lea.hbm %s3589_s15, 1024 }
 0x737   :  { %p2652_p5 = scmp.ne.s32.totalorder %s3589_s15, %s2651_s13  ;;  %p2655_p6 = scmp.lt.u32.totalorder %s2651_s13, %s3589_s15 }
 0x739   :  { %p2657_p7 = pnand %p2655_p6, %p2652_p5 }
 0x73b   :  { %2660 = shalt.err (!%p2657_p7)
}
 0x73c   :  { %s2677_s14 = smov 512   ;;  %s2678_s26 = smov 32  }
 0x73d   :  { %2514 = dma.vmem_to_hbm [thread:$0]  %s2509_s20, 1024, %s3589_s15, [#allocation3], %s2677_s14, %s2677_s14, %s2678_s26  }
 0x73e   :  { %s2661_s30 = scalar_lea.hbm %s3590_s16, 16 }
 0x73f   :  { %p2662_p8 = scmp.ne.s32.totalorder %s3590_s16, %s2661_s30  ;;  %p2665_p9 = scmp.lt.u32.totalorder %s2661_s30, %s3590_s16 }
 0x741   :  { %p2667_p10 = pnand %p2665_p9, %p2662_p8 }
 0x7c1   :  { %v2493_v60 = vpop.xlane.xlu0 %2492 }
 0x7c2   :  { %v2494_v9 = vrot.slane %v2493_v60, 4 }
 0x7c4   :  { %v2495_v59 = vadd.f32 %v2494_v9, %v2493_v60 }
 0x7c6   :  { %v2496_v57 = vrot.slane %v2495_v59, 2 }
 0x7c8   :  { %v2497_v26 = vadd.f32 %v2496_v57, %v2495_v59 }
 0x7ca   :  { %v2498_v31 = vrot.slane %v2497_v26, 1 }
 0x7cc   :  { %v2499_v34 = vadd.f32 %v2498_v31, %v2497_v26 }
 0x7ce   :  { %2603 = vpush %v2499_v34 }
 0x7ff   :  { %s2604_s2 = spop %2603 }
 0x800   :  { %2502 = sst [smem:[#allocation5]] %s2604_s2 }
 0x801   :  { %2670 = shalt.err (!%p2667_p10)
}
 0x802   :  { %s2679_s17 = smov [#allocation5]  }
 0x803   :  { %2522 = dma.smem_to_hbm %s2679_s17, 16, %s3590_s16, [#allocation4]  }
 0x804   :  { %2671 = dma.done.wait [#allocation3], 1024  }
 0x805   :  { %2672 = vsyncadd [#allocation3], 4294966272 }
 0x806   :  { %2673 = dma.done.wait [#allocation4], 16  }
 0x807   :  { %2674 = vsyncadd [#allocation4], 4294967280 }
 0x808   :  { %2529 = sfence }
 0x809   :  { %2530 = vsyncpa [#allocation3], 1 }
 0x80a   :  { %2531 = vsyncpa [#allocation4], 1 }

</bundles_post_ra>
